<compile_context>
chip_gen: v6e
topology: v6e:2x2x1
jax: 0.10.0
libtpu: 0.0.40
codegen_flags: <defaults>
</compile_context>

<pallas_src>
import functools

import jax
import jax.numpy as jnp
from jax.experimental import pallas as pl
from jax.experimental.pallas import tpu as pltpu

BN_EPS = 1e-5
LANE = 128
SUBLANE = 8


def _round_up(n, m):
    return ((n + m - 1) // m) * m


def _gelu_tanh(x):
    return jax.nn.gelu(x, approximate=True)     # tanh -> EUP slot


def _gelu_exact(x):
    return jax.nn.gelu(x, approximate=False)    # erf (reference only)


def default_act_dtype():
    """bf16 elementwise on chips with a bf16 VPU/EUP (v6e/v7x); f32 otherwise."""
    try:
        kind = jax.devices()[0].device_kind.lower()
    except Exception:
        return "bfloat16"
    if any(t in kind for t in ("v2", "v3", "v4", "v5 lite", "v5lite", "v5e")):
        return "float32"
    return "bfloat16"


def _choose_tile_batch(batch):
    """Largest tile with >=2 grid steps and <=12.5% batch-padding waste."""
    batch8 = _round_up(max(int(batch), 1), SUBLANE)
    if batch8 <= 2 * SUBLANE:          # tiny batch: a single small step is cheapest
        return batch8
    for tb in (1024, 512, 256, 128, 64, 32, 16, 8):
        if tb >= batch:                # would collapse to a single (padded) step
            continue
        padded = _round_up(batch, tb)
        if (padded - batch) / padded <= 0.125:
            return tb
    return min(batch8, 1024)


# -----------------------------------------------------------------------------
# Kernel
# -----------------------------------------------------------------------------
def _make_kernel(out_dims, act_dtype):
    """Fused forward for fixed per-layer output dims and activation dtype."""
    act_dtype = jnp.dtype(act_dtype)
    offsets, off = [], 0
    for d in out_dims:
        offsets.append(off)
        off += d

    def kernel(x_ref, c_ref, w0_ref, w1_ref, wres_ref, wa_ref, wb_ref, out_ref):
        def get_w(li):                 # li is a static Python int (unrolled body)
            if li == 0:
                return w0_ref[...]
            if li == 1:
                return w1_ref[...]
            if li == 10:
                return wa_ref[...]
            if li == 11:
                return wb_ref[...]
            return wres_ref[li - 2]    # (256, 256) slice of the packed buffer

        def layer_f32(h, li):
            w = get_w(li)
            # h.astype is a no-op when activations are already bf16.
            y = jnp.dot(h.astype(w.dtype), w, preferred_element_type=jnp.float32)
            o, d = offsets[li], out_dims[li]
            return y + c_ref[:, o:o + d]          # folded bias + BN shift (f32)

        def layer(h, li):
            return layer_f32(h, li).astype(act_dtype)

        h = x_ref[...].astype(act_dtype)

        # main: Linear(in,512)+BN -> GELU -> Dropout(0.4)[identity in eval]
        h = _gelu_tanh(layer(h, 0))
        # main: Linear(512,256)+BN -> GELU -> Dropout(0.3)[identity in eval]
        h = _gelu_tanh(layer(h, 1))

        # 2 res blocks x 2 ResidualLayer(256): x + Lin+BN -> GELU -> Lin+BN
        li = 2
        for _ in range(4):
            r = _gelu_tanh(layer(h, li))
            h = h + layer(r, li + 1)
            li += 2

        # final: Linear(256,128) -> GELU -> Linear(128,out_pad)
        h = _gelu_tanh(layer(h, li))
        out_ref[...] = layer_f32(h, li + 1).astype(out_ref.dtype)

    return kernel


# -----------------------------------------------------------------------------
# Parameters (PyTorch-style init) + fold/pad/pack preparation
# -----------------------------------------------------------------------------
def init_params(key, input_size, output_size):
    """Per-layer (W[in,out], b[out], bn-or-None): kaiming_normal_(fan_in,
    leaky_relu) weights, N(0, 0.01) biases, freshly-initialized BatchNorm."""
    def linear_init(k, fan_in, fan_out):
        kw, kb = jax.random.split(k)
        gain = jnp.sqrt(2.0)   # kaiming_normal_, nonlinearity='leaky_relu' (a ~ 0)
        w = jax.random.normal(kw, (fan_in, fan_out), jnp.float32) * (gain / jnp.sqrt(fan_in))
        b = jax.random.normal(kb, (fan_out,), jnp.float32) * 0.01
        return w, b

    def bn_init(dim):
        # (gamma, beta, running_mean, running_var)
        return (jnp.ones((dim,), jnp.float32), jnp.zeros((dim,), jnp.float32),
                jnp.zeros((dim,), jnp.float32), jnp.ones((dim,), jnp.float32))

    specs = [(input_size, 512, True), (512, 256, True)]
    specs += [(256, 256, True)] * 8
    specs += [(256, 128, False), (128, output_size, False)]

    keys = jax.random.split(key, len(specs))
    layers = []
    for k, (fi, fo, has_bn) in zip(keys, specs):
        w, b = linear_init(k, fi, fo)
        layers.append((w, b, bn_init(fo) if has_bn else None))
    return layers


def fold_and_pad(layers, output_size):
    """Fold eval-mode BN + bias into (W', c'); lane-pad only the OUTPUT layer."""
    out_pad = _round_up(output_size, LANE)
    n = len(layers)
    weights, shift_rows = [], []
    for li, (w, b, bn) in enumerate(layers):
        if bn is not None:
            gamma, beta, mean, var = bn
            s = gamma / jnp.sqrt(var + BN_EPS)
            t = beta - mean * s
            w = w * s[None, :]
            c = b * s + t
        else:
            c = b
        if li == n - 1 and w.shape[1] != out_pad:
            pad = out_pad - w.shape[1]
            w = jnp.pad(w, ((0, 0), (0, pad)))
            c = jnp.pad(c, (0, pad))
        weights.append(w)
        shift_rows.append(c)
    shifts = jnp.concatenate(shift_rows)[None, :]   # (1, sum(out_dims)), f32
    return weights, shifts


def pack_weights(weights, dtype=jnp.bfloat16):
    """Cast to bf16 and pack the 8 residual (256,256) weights into one buffer."""
    w = [jnp.asarray(v, dtype) for v in weights]
    return w[0], w[1], jnp.stack(w[2:10], axis=0), w[10], w[11]


# -----------------------------------------------------------------------------
# Wrapper
# -----------------------------------------------------------------------------
@functools.partial(jax.jit,
                   static_argnames=("output_size", "tile_batch", "act_dtype"))
def deep_resnet_forward(x, shifts, w0, w1, wres, wa, wb, *,
                        output_size, tile_batch=None, act_dtype="bfloat16"):
    batch, feat = x.shape
    out_pad = int(wb.shape[1])

    dims = [(int(w0.shape[0]), int(w0.shape[1])),
            (int(w1.shape[0]), int(w1.shape[1]))]
    dims += [(int(wres.shape[1]), int(wres.shape[2]))] * int(wres.shape[0])
    dims += [(int(wa.shape[0]), int(wa.shape[1])),
             (int(wb.shape[0]), int(wb.shape[1]))]
    out_dims = tuple(b for _, b in dims)

    if tile_batch is None:
        tb = _choose_tile_batch(batch)
    else:
        tb = min(1024, max(SUBLANE, _round_up(int(tile_batch), SUBLANE)))
    batch_pad = _round_up(batch, tb)

    x32 = x.astype(jnp.float32)
    if batch_pad != batch:
        x32 = jnp.pad(x32, ((0, batch_pad - batch), (0, 0)))

    grid = (batch_pad // tb,)
    const2 = lambda i: (0, 0)
    in_specs = [
        pl.BlockSpec((tb, feat), lambda i: (i, 0)),            # x: full feature dim
        pl.BlockSpec(tuple(shifts.shape), const2),             # folded shifts (resident)
        pl.BlockSpec(tuple(w0.shape), const2),                 # weights: VMEM-resident
        pl.BlockSpec(tuple(w1.shape), const2),
        pl.BlockSpec(tuple(wres.shape), lambda i: (0, 0, 0)),  # packed residual weights
        pl.BlockSpec(tuple(wa.shape), const2),
        pl.BlockSpec(tuple(wb.shape), const2),
    ]
    out_spec = pl.BlockSpec((tb, out_pad), lambda i: (i, 0))   # lane-dense output

    flops = 2 * batch_pad * sum(a * b for a, b in dims)
    transcendentals = batch_pad * (512 + 256 + 4 * 256 + 128)  # one tanh per GELU elem
    bytes_accessed = (batch_pad * feat * 4
                      + sum(int(w.size) * w.dtype.itemsize for w in (w0, w1, wres, wa, wb))
                      + int(shifts.size) * shifts.dtype.itemsize
                      + batch_pad * out_pad * 4)

    out = pl.pallas_call(
        _make_kernel(out_dims, act_dtype),
        out_shape=jax.ShapeDtypeStruct((batch_pad, out_pad), jnp.float32),
        grid=grid,
        in_specs=in_specs,
        out_specs=out_spec,
        compiler_params=pltpu.CompilerParams(dimension_semantics=("parallel",)),
        cost_estimate=pl.CostEstimate(flops=flops,
                                      transcendentals=transcendentals,
                                      bytes_accessed=bytes_accessed),
    )(x32, shifts, w0, w1, wres, wa, wb)

    return out[:batch, :output_size]


# -----------------------------------------------------------------------------
# Plain-JAX references (sanity checks)
# -----------------------------------------------------------------------------
def reference_forward_original(x, layers):
    """Original (unfolded, f32, exact-erf GELU) eval-mode DeepResNet.forward."""
    def layer(h, li):
        w, b, bn = layers[li]
        h = h @ w + b
        if bn is not None:
            gamma, beta, mean, var = bn
            h = (h - mean) / jnp.sqrt(var + BN_EPS) * gamma + beta
        return h

    h = x.astype(jnp.float32)
    h = _gelu_exact(layer(h, 0))
    h = _gelu_exact(layer(h, 1))
    li = 2
    for _ in range(4):
        r = _gelu_exact(layer(h, li))
        h = h + layer(r, li + 1)
        li += 2
    h = _gelu_exact(layer(h, li))
    return layer(h, li + 1)


def reference_forward_folded(x, weights, shifts, *, act_dtype=jnp.float32,
                             approximate=False):
    """Same structure as the kernel, configurable precision / GELU variant."""
    act_dtype = jnp.dtype(act_dtype)
    out_dims = [int(w.shape[1]) for w in weights]
    offsets, o = [], 0
    for d in out_dims:
        offsets.append(o)
        o += d
    act = _gelu_tanh if approximate else _gelu_exact

    def layer_f32(h, li):
        w = weights[li]
        y = jnp.dot(h.astype(w.dtype), w, preferred_element_type=jnp.float32)
        return y + shifts[:, offsets[li]:offsets[li] + out_dims[li]]

    def layer(h, li):
        return layer_f32(h, li).astype(act_dtype)

    h = x.astype(act_dtype)
    h = act(layer(h, 0))
    h = act(layer(h, 1))
    li = 2
    for _ in range(4):
        r = act(layer(h, li))
        h = h + layer(r, li + 1)
        li += 2
    h = act(layer(h, li))
    return layer_f32(h, li + 1)


# -----------------------------------------------------------------------------
if __name__ == "__main__":
    input_size = 32
    output_size = 16
    batch = 8

    key = jax.random.PRNGKey(0)
    kx, kp = jax.random.split(key)
    x = jax.random.normal(kx, (batch, input_size), jnp.float32)

    layers = init_params(kp, input_size, output_size)
    weights_f32, shifts = fold_and_pad(layers, output_size)
    weights_bf16 = [w.astype(jnp.bfloat16) for w in weights_f32]
    w0, w1, wres, wa, wb = pack_weights(weights_bf16)
    act_dtype = default_act_dtype()

    out = deep_resnet_forward(x, shifts, w0, w1, wres, wa, wb,
                              output_size=output_size, act_dtype=act_dtype)
    out = jax.block_until_ready(out)
    assert out.shape == (batch, output_size)
    assert bool(jnp.all(jnp.isfinite(out)))

    # 1) Folding/padding preserves the original eval-mode semantics (f32, exact GELU).
    ref_orig = reference_forward_original(x, layers)
    ref_fold = reference_forward_folded(x, weights_f32, shifts)[:, :output_size]
    assert bool(jnp.allclose(ref_fold, ref_orig, rtol=1e-4, atol=1e-4))

    # 2) Kernel matches the same reduced-precision math (bf16 matmuls, tanh GELU).
    ref_red = reference_forward_folded(x, weights_bf16, shifts,
                                       act_dtype=act_dtype,
                                       approximate=True)[:, :output_size]
    assert bool(jnp.allclose(out, ref_red, rtol=5e-2, atol=5e-2))

    print("KERNEL_OK")
</pallas_src>

<mosaic_0001>
module attributes {stable_mosaic.version = 11 : i64} {
  func.func @kernel(%arg0: i32, %arg1: memref<8x32xf32, #tpu.memory_space<vmem>>, %arg2: memref<1x3072xf32, #tpu.memory_space<vmem>>, %arg3: memref<32x512xbf16, #tpu.memory_space<vmem>>, %arg4: memref<512x256xbf16, #tpu.memory_space<vmem>>, %arg5: memref<8x256x256xbf16, #tpu.memory_space<vmem>>, %arg6: memref<256x128xbf16, #tpu.memory_space<vmem>>, %arg7: memref<128x128xbf16, #tpu.memory_space<vmem>>, %arg8: memref<8x128xf32, #tpu.memory_space<vmem>>) attributes {dimension_semantics = [#tpu.dimension_semantics<parallel>], iteration_bounds = array<i64: 1>, scalar_prefetch = 0 : i64, scratch_operands = 0 : i64, tpu.core_type = #tpu.core_type<tc>, window_params = [{transform_indices = @transform_0, window_bounds = array<i64: 8, 32>}, {pipeline_mode = #tpu.pipeline_mode<synchronous>, transform_indices = @transform_1, window_bounds = array<i64: 1, 3072>}, {pipeline_mode = #tpu.pipeline_mode<synchronous>, transform_indices = @transform_2, window_bounds = array<i64: 32, 512>}, {pipeline_mode = #tpu.pipeline_mode<synchronous>, transform_indices = @transform_3, window_bounds = array<i64: 512, 256>}, {pipeline_mode = #tpu.pipeline_mode<synchronous>, transform_indices = @transform_4, window_bounds = array<i64: 8, 256, 256>}, {pipeline_mode = #tpu.pipeline_mode<synchronous>, transform_indices = @transform_5, window_bounds = array<i64: 256, 128>}, {pipeline_mode = #tpu.pipeline_mode<synchronous>, transform_indices = @transform_6, window_bounds = array<i64: 128, 128>}, {transform_indices = @transform_7, window_bounds = array<i64: 8, 128>}]} {
    %c0 = arith.constant 0 : index
    %c0_0 = arith.constant 0 : index
    %0 = vector.load %arg1[%c0, %c0_0] : memref<8x32xf32, #tpu.memory_space<vmem>>, vector<8x32xf32>
    %1 = arith.truncf %0 : vector<8x32xf32> to vector<8x32xbf16>
    %c0_1 = arith.constant 0 : index
    %c0_2 = arith.constant 0 : index
    %2 = vector.load %arg3[%c0_1, %c0_2] : memref<32x512xbf16, #tpu.memory_space<vmem>>, vector<32x512xbf16>
    %cst = arith.constant dense<0.000000e+00> : vector<8x512xf32>
    %3 = tpu.matmul %1, %2, %cst {dimension_numbers = #tpu.dot_dimension_numbers<[1], [0], [0], [1], [0, 0, 1, 1], [], []>} : vector<8x32xbf16>, vector<32x512xbf16>, vector<8x512xf32> -> vector<8x512xf32>
    %c0_3 = arith.constant 0 : index
    %c0_4 = arith.constant 0 : index
    %4 = vector.load %arg2[%c0_3, %c0_4] : memref<1x3072xf32, #tpu.memory_space<vmem>>, vector<1x512xf32>
    %5 = vector.broadcast %4 : vector<1x512xf32> to vector<8x512xf32>
    %6 = arith.addf %3, %5 : vector<8x512xf32>
    %7 = arith.truncf %6 : vector<8x512xf32> to vector<8x512xbf16>
    %8 = arith.mulf %7, %7 : vector<8x512xbf16>
    %9 = arith.mulf %7, %8 : vector<8x512xbf16>
    %cst_5 = arith.constant 4.467770e-02 : bf16
    %10 = vector.broadcast %cst_5 : bf16 to vector<8x512xbf16>
    %11 = arith.mulf %10, %9 : vector<8x512xbf16>
    %12 = arith.addf %7, %11 : vector<8x512xbf16>
    %cst_6 = arith.constant 7.968750e-01 : bf16
    %13 = vector.broadcast %cst_6 : bf16 to vector<8x512xbf16>
    %14 = arith.mulf %13, %12 : vector<8x512xbf16>
    %15 = math.tanh %14 : vector<8x512xbf16>
    %cst_7 = arith.constant 1.000000e+00 : bf16
    %16 = vector.broadcast %cst_7 : bf16 to vector<8x512xbf16>
    %17 = arith.addf %16, %15 : vector<8x512xbf16>
    %cst_8 = arith.constant 5.000000e-01 : bf16
    %18 = vector.broadcast %cst_8 : bf16 to vector<8x512xbf16>
    %19 = arith.mulf %18, %17 : vector<8x512xbf16>
    %20 = arith.mulf %7, %19 : vector<8x512xbf16>
    %c0_9 = arith.constant 0 : index
    %c0_10 = arith.constant 0 : index
    %21 = vector.load %arg4[%c0_9, %c0_10] : memref<512x256xbf16, #tpu.memory_space<vmem>>, vector<512x256xbf16>
    %cst_11 = arith.constant dense<0.000000e+00> : vector<8x256xf32>
    %22 = tpu.matmul %20, %21, %cst_11 {dimension_numbers = #tpu.dot_dimension_numbers<[1], [0], [0], [1], [0, 0, 1, 1], [], []>} : vector<8x512xbf16>, vector<512x256xbf16>, vector<8x256xf32> -> vector<8x256xf32>
    %c0_12 = arith.constant 0 : index
    %c512 = arith.constant 512 : index
    %23 = vector.load %arg2[%c0_12, %c512] : memref<1x3072xf32, #tpu.memory_space<vmem>>, vector<1x256xf32>
    %24 = vector.broadcast %23 : vector<1x256xf32> to vector<8x256xf32>
    %25 = arith.addf %22, %24 : vector<8x256xf32>
    %26 = arith.truncf %25 : vector<8x256xf32> to vector<8x256xbf16>
    %27 = arith.mulf %26, %26 : vector<8x256xbf16>
    %28 = arith.mulf %26, %27 : vector<8x256xbf16>
    %cst_13 = arith.constant 4.467770e-02 : bf16
    %29 = vector.broadcast %cst_13 : bf16 to vector<8x256xbf16>
    %30 = arith.mulf %29, %28 : vector<8x256xbf16>
    %31 = arith.addf %26, %30 : vector<8x256xbf16>
    %cst_14 = arith.constant 7.968750e-01 : bf16
    %32 = vector.broadcast %cst_14 : bf16 to vector<8x256xbf16>
    %33 = arith.mulf %32, %31 : vector<8x256xbf16>
    %34 = math.tanh %33 : vector<8x256xbf16>
    %cst_15 = arith.constant 1.000000e+00 : bf16
    %35 = vector.broadcast %cst_15 : bf16 to vector<8x256xbf16>
    %36 = arith.addf %35, %34 : vector<8x256xbf16>
    %cst_16 = arith.constant 5.000000e-01 : bf16
    %37 = vector.broadcast %cst_16 : bf16 to vector<8x256xbf16>
    %38 = arith.mulf %37, %36 : vector<8x256xbf16>
    %39 = arith.mulf %26, %38 : vector<8x256xbf16>
    %c0_17 = arith.constant 0 : index
    %c0_18 = arith.constant 0 : index
    %c0_19 = arith.constant 0 : index
    %40 = vector.load %arg5[%c0_17, %c0_18, %c0_19] : memref<8x256x256xbf16, #tpu.memory_space<vmem>>, vector<1x256x256xbf16>
    %41 = vector.shape_cast %40 : vector<1x256x256xbf16> to vector<256x256xbf16>
    %cst_20 = arith.constant dense<0.000000e+00> : vector<8x256xf32>
    %42 = tpu.matmul %39, %41, %cst_20 {dimension_numbers = #tpu.dot_dimension_numbers<[1], [0], [0], [1], [0, 0, 1, 1], [], []>} : vector<8x256xbf16>, vector<256x256xbf16>, vector<8x256xf32> -> vector<8x256xf32>
    %c0_21 = arith.constant 0 : index
    %c768 = arith.constant 768 : index
    %43 = vector.load %arg2[%c0_21, %c768] : memref<1x3072xf32, #tpu.memory_space<vmem>>, vector<1x256xf32>
    %44 = vector.broadcast %43 : vector<1x256xf32> to vector<8x256xf32>
    %45 = arith.addf %42, %44 : vector<8x256xf32>
    %46 = arith.truncf %45 : vector<8x256xf32> to vector<8x256xbf16>
    %47 = arith.mulf %46, %46 : vector<8x256xbf16>
    %48 = arith.mulf %46, %47 : vector<8x256xbf16>
    %cst_22 = arith.constant 4.467770e-02 : bf16
    %49 = vector.broadcast %cst_22 : bf16 to vector<8x256xbf16>
    %50 = arith.mulf %49, %48 : vector<8x256xbf16>
    %51 = arith.addf %46, %50 : vector<8x256xbf16>
    %cst_23 = arith.constant 7.968750e-01 : bf16
    %52 = vector.broadcast %cst_23 : bf16 to vector<8x256xbf16>
    %53 = arith.mulf %52, %51 : vector<8x256xbf16>
    %54 = math.tanh %53 : vector<8x256xbf16>
    %cst_24 = arith.constant 1.000000e+00 : bf16
    %55 = vector.broadcast %cst_24 : bf16 to vector<8x256xbf16>
    %56 = arith.addf %55, %54 : vector<8x256xbf16>
    %cst_25 = arith.constant 5.000000e-01 : bf16
    %57 = vector.broadcast %cst_25 : bf16 to vector<8x256xbf16>
    %58 = arith.mulf %57, %56 : vector<8x256xbf16>
    %59 = arith.mulf %46, %58 : vector<8x256xbf16>
    %c1 = arith.constant 1 : index
    %c0_26 = arith.constant 0 : index
    %c0_27 = arith.constant 0 : index
    %60 = vector.load %arg5[%c1, %c0_26, %c0_27] : memref<8x256x256xbf16, #tpu.memory_space<vmem>>, vector<1x256x256xbf16>
    %61 = vector.shape_cast %60 : vector<1x256x256xbf16> to vector<256x256xbf16>
    %cst_28 = arith.constant dense<0.000000e+00> : vector<8x256xf32>
    %62 = tpu.matmul %59, %61, %cst_28 {dimension_numbers = #tpu.dot_dimension_numbers<[1], [0], [0], [1], [0, 0, 1, 1], [], []>} : vector<8x256xbf16>, vector<256x256xbf16>, vector<8x256xf32> -> vector<8x256xf32>
    %c0_29 = arith.constant 0 : index
    %c1024 = arith.constant 1024 : index
    %63 = vector.load %arg2[%c0_29, %c1024] : memref<1x3072xf32, #tpu.memory_space<vmem>>, vector<1x256xf32>
    %64 = vector.broadcast %63 : vector<1x256xf32> to vector<8x256xf32>
    %65 = arith.addf %62, %64 : vector<8x256xf32>
    %66 = arith.truncf %65 : vector<8x256xf32> to vector<8x256xbf16>
    %67 = arith.addf %39, %66 : vector<8x256xbf16>
    %c2 = arith.constant 2 : index
    %c0_30 = arith.constant 0 : index
    %c0_31 = arith.constant 0 : index
    %68 = vector.load %arg5[%c2, %c0_30, %c0_31] : memref<8x256x256xbf16, #tpu.memory_space<vmem>>, vector<1x256x256xbf16>
    %69 = vector.shape_cast %68 : vector<1x256x256xbf16> to vector<256x256xbf16>
    %cst_32 = arith.constant dense<0.000000e+00> : vector<8x256xf32>
    %70 = tpu.matmul %67, %69, %cst_32 {dimension_numbers = #tpu.dot_dimension_numbers<[1], [0], [0], [1], [0, 0, 1, 1], [], []>} : vector<8x256xbf16>, vector<256x256xbf16>, vector<8x256xf32> -> vector<8x256xf32>
    %c0_33 = arith.constant 0 : index
    %c1280 = arith.constant 1280 : index
    %71 = vector.load %arg2[%c0_33, %c1280] : memref<1x3072xf32, #tpu.memory_space<vmem>>, vector<1x256xf32>
    %72 = vector.broadcast %71 : vector<1x256xf32> to vector<8x256xf32>
    %73 = arith.addf %70, %72 : vector<8x256xf32>
    %74 = arith.truncf %73 : vector<8x256xf32> to vector<8x256xbf16>
    %75 = arith.mulf %74, %74 : vector<8x256xbf16>
    %76 = arith.mulf %74, %75 : vector<8x256xbf16>
    %cst_34 = arith.constant 4.467770e-02 : bf16
    %77 = vector.broadcast %cst_34 : bf16 to vector<8x256xbf16>
    %78 = arith.mulf %77, %76 : vector<8x256xbf16>
    %79 = arith.addf %74, %78 : vector<8x256xbf16>
    %cst_35 = arith.constant 7.968750e-01 : bf16
    %80 = vector.broadcast %cst_35 : bf16 to vector<8x256xbf16>
    %81 = arith.mulf %80, %79 : vector<8x256xbf16>
    %82 = math.tanh %81 : vector<8x256xbf16>
    %cst_36 = arith.constant 1.000000e+00 : bf16
    %83 = vector.broadcast %cst_36 : bf16 to vector<8x256xbf16>
    %84 = arith.addf %83, %82 : vector<8x256xbf16>
    %cst_37 = arith.constant 5.000000e-01 : bf16
    %85 = vector.broadcast %cst_37 : bf16 to vector<8x256xbf16>
    %86 = arith.mulf %85, %84 : vector<8x256xbf16>
    %87 = arith.mulf %74, %86 : vector<8x256xbf16>
    %c3 = arith.constant 3 : index
    %c0_38 = arith.constant 0 : index
    %c0_39 = arith.constant 0 : index
    %88 = vector.load %arg5[%c3, %c0_38, %c0_39] : memref<8x256x256xbf16, #tpu.memory_space<vmem>>, vector<1x256x256xbf16>
    %89 = vector.shape_cast %88 : vector<1x256x256xbf16> to vector<256x256xbf16>
    %cst_40 = arith.constant dense<0.000000e+00> : vector<8x256xf32>
    %90 = tpu.matmul %87, %89, %cst_40 {dimension_numbers = #tpu.dot_dimension_numbers<[1], [0], [0], [1], [0, 0, 1, 1], [], []>} : vector<8x256xbf16>, vector<256x256xbf16>, vector<8x256xf32> -> vector<8x256xf32>
    %c0_41 = arith.constant 0 : index
    %c1536 = arith.constant 1536 : index
    %91 = vector.load %arg2[%c0_41, %c1536] : memref<1x3072xf32, #tpu.memory_space<vmem>>, vector<1x256xf32>
    %92 = vector.broadcast %91 : vector<1x256xf32> to vector<8x256xf32>
    %93 = arith.addf %90, %92 : vector<8x256xf32>
    %94 = arith.truncf %93 : vector<8x256xf32> to vector<8x256xbf16>
    %95 = arith.addf %67, %94 : vector<8x256xbf16>
    %c4 = arith.constant 4 : index
    %c0_42 = arith.constant 0 : index
    %c0_43 = arith.constant 0 : index
    %96 = vector.load %arg5[%c4, %c0_42, %c0_43] : memref<8x256x256xbf16, #tpu.memory_space<vmem>>, vector<1x256x256xbf16>
    %97 = vector.shape_cast %96 : vector<1x256x256xbf16> to vector<256x256xbf16>
    %cst_44 = arith.constant dense<0.000000e+00> : vector<8x256xf32>
    %98 = tpu.matmul %95, %97, %cst_44 {dimension_numbers = #tpu.dot_dimension_numbers<[1], [0], [0], [1], [0, 0, 1, 1], [], []>} : vector<8x256xbf16>, vector<256x256xbf16>, vector<8x256xf32> -> vector<8x256xf32>
    %c0_45 = arith.constant 0 : index
    %c1792 = arith.constant 1792 : index
    %99 = vector.load %arg2[%c0_45, %c1792] : memref<1x3072xf32, #tpu.memory_space<vmem>>, vector<1x256xf32>
    %100 = vector.broadcast %99 : vector<1x256xf32> to vector<8x256xf32>
    %101 = arith.addf %98, %100 : vector<8x256xf32>
    %102 = arith.truncf %101 : vector<8x256xf32> to vector<8x256xbf16>
    %103 = arith.mulf %102, %102 : vector<8x256xbf16>
    %104 = arith.mulf %102, %103 : vector<8x256xbf16>
    %cst_46 = arith.constant 4.467770e-02 : bf16
    %105 = vector.broadcast %cst_46 : bf16 to vector<8x256xbf16>
    %106 = arith.mulf %105, %104 : vector<8x256xbf16>
    %107 = arith.addf %102, %106 : vector<8x256xbf16>
    %cst_47 = arith.constant 7.968750e-01 : bf16
    %108 = vector.broadcast %cst_47 : bf16 to vector<8x256xbf16>
    %109 = arith.mulf %108, %107 : vector<8x256xbf16>
    %110 = math.tanh %109 : vector<8x256xbf16>
    %cst_48 = arith.constant 1.000000e+00 : bf16
    %111 = vector.broadcast %cst_48 : bf16 to vector<8x256xbf16>
    %112 = arith.addf %111, %110 : vector<8x256xbf16>
    %cst_49 = arith.constant 5.000000e-01 : bf16
    %113 = vector.broadcast %cst_49 : bf16 to vector<8x256xbf16>
    %114 = arith.mulf %113, %112 : vector<8x256xbf16>
    %115 = arith.mulf %102, %114 : vector<8x256xbf16>
    %c5 = arith.constant 5 : index
    %c0_50 = arith.constant 0 : index
    %c0_51 = arith.constant 0 : index
    %116 = vector.load %arg5[%c5, %c0_50, %c0_51] : memref<8x256x256xbf16, #tpu.memory_space<vmem>>, vector<1x256x256xbf16>
    %117 = vector.shape_cast %116 : vector<1x256x256xbf16> to vector<256x256xbf16>
    %cst_52 = arith.constant dense<0.000000e+00> : vector<8x256xf32>
    %118 = tpu.matmul %115, %117, %cst_52 {dimension_numbers = #tpu.dot_dimension_numbers<[1], [0], [0], [1], [0, 0, 1, 1], [], []>} : vector<8x256xbf16>, vector<256x256xbf16>, vector<8x256xf32> -> vector<8x256xf32>
    %c0_53 = arith.constant 0 : index
    %c2048 = arith.constant 2048 : index
    %119 = vector.load %arg2[%c0_53, %c2048] : memref<1x3072xf32, #tpu.memory_space<vmem>>, vector<1x256xf32>
    %120 = vector.broadcast %119 : vector<1x256xf32> to vector<8x256xf32>
    %121 = arith.addf %118, %120 : vector<8x256xf32>
    %122 = arith.truncf %121 : vector<8x256xf32> to vector<8x256xbf16>
    %123 = arith.addf %95, %122 : vector<8x256xbf16>
    %c6 = arith.constant 6 : index
    %c0_54 = arith.constant 0 : index
    %c0_55 = arith.constant 0 : index
    %124 = vector.load %arg5[%c6, %c0_54, %c0_55] : memref<8x256x256xbf16, #tpu.memory_space<vmem>>, vector<1x256x256xbf16>
    %125 = vector.shape_cast %124 : vector<1x256x256xbf16> to vector<256x256xbf16>
    %cst_56 = arith.constant dense<0.000000e+00> : vector<8x256xf32>
    %126 = tpu.matmul %123, %125, %cst_56 {dimension_numbers = #tpu.dot_dimension_numbers<[1], [0], [0], [1], [0, 0, 1, 1], [], []>} : vector<8x256xbf16>, vector<256x256xbf16>, vector<8x256xf32> -> vector<8x256xf32>
    %c0_57 = arith.constant 0 : index
    %c2304 = arith.constant 2304 : index
    %127 = vector.load %arg2[%c0_57, %c2304] : memref<1x3072xf32, #tpu.memory_space<vmem>>, vector<1x256xf32>
    %128 = vector.broadcast %127 : vector<1x256xf32> to vector<8x256xf32>
    %129 = arith.addf %126, %128 : vector<8x256xf32>
    %130 = arith.truncf %129 : vector<8x256xf32> to vector<8x256xbf16>
    %131 = arith.mulf %130, %130 : vector<8x256xbf16>
    %132 = arith.mulf %130, %131 : vector<8x256xbf16>
    %cst_58 = arith.constant 4.467770e-02 : bf16
    %133 = vector.broadcast %cst_58 : bf16 to vector<8x256xbf16>
    %134 = arith.mulf %133, %132 : vector<8x256xbf16>
    %135 = arith.addf %130, %134 : vector<8x256xbf16>
    %cst_59 = arith.constant 7.968750e-01 : bf16
    %136 = vector.broadcast %cst_59 : bf16 to vector<8x256xbf16>
    %137 = arith.mulf %136, %135 : vector<8x256xbf16>
    %138 = math.tanh %137 : vector<8x256xbf16>
    %cst_60 = arith.constant 1.000000e+00 : bf16
    %139 = vector.broadcast %cst_60 : bf16 to vector<8x256xbf16>
    %140 = arith.addf %139, %138 : vector<8x256xbf16>
    %cst_61 = arith.constant 5.000000e-01 : bf16
    %141 = vector.broadcast %cst_61 : bf16 to vector<8x256xbf16>
    %142 = arith.mulf %141, %140 : vector<8x256xbf16>
    %143 = arith.mulf %130, %142 : vector<8x256xbf16>
    %c7 = arith.constant 7 : index
    %c0_62 = arith.constant 0 : index
    %c0_63 = arith.constant 0 : index
    %144 = vector.load %arg5[%c7, %c0_62, %c0_63] : memref<8x256x256xbf16, #tpu.memory_space<vmem>>, vector<1x256x256xbf16>
    %145 = vector.shape_cast %144 : vector<1x256x256xbf16> to vector<256x256xbf16>
    %cst_64 = arith.constant dense<0.000000e+00> : vector<8x256xf32>
    %146 = tpu.matmul %143, %145, %cst_64 {dimension_numbers = #tpu.dot_dimension_numbers<[1], [0], [0], [1], [0, 0, 1, 1], [], []>} : vector<8x256xbf16>, vector<256x256xbf16>, vector<8x256xf32> -> vector<8x256xf32>
    %c0_65 = arith.constant 0 : index
    %c2560 = arith.constant 2560 : index
    %147 = vector.load %arg2[%c0_65, %c2560] : memref<1x3072xf32, #tpu.memory_space<vmem>>, vector<1x256xf32>
    %148 = vector.broadcast %147 : vector<1x256xf32> to vector<8x256xf32>
    %149 = arith.addf %146, %148 : vector<8x256xf32>
    %150 = arith.truncf %149 : vector<8x256xf32> to vector<8x256xbf16>
    %151 = arith.addf %123, %150 : vector<8x256xbf16>
    %c0_66 = arith.constant 0 : index
    %c0_67 = arith.constant 0 : index
    %152 = vector.load %arg6[%c0_66, %c0_67] : memref<256x128xbf16, #tpu.memory_space<vmem>>, vector<256x128xbf16>
    %cst_68 = arith.constant dense<0.000000e+00> : vector<8x128xf32>
    %153 = tpu.matmul %151, %152, %cst_68 {dimension_numbers = #tpu.dot_dimension_numbers<[1], [0], [0], [1], [0, 0, 1, 1], [], []>} : vector<8x256xbf16>, vector<256x128xbf16>, vector<8x128xf32> -> vector<8x128xf32>
    %c0_69 = arith.constant 0 : index
    %c2816 = arith.constant 2816 : index
    %154 = vector.load %arg2[%c0_69, %c2816] : memref<1x3072xf32, #tpu.memory_space<vmem>>, vector<1x128xf32>
    %155 = vector.broadcast %154 : vector<1x128xf32> to vector<8x128xf32>
    %156 = arith.addf %153, %155 : vector<8x128xf32>
    %157 = arith.truncf %156 : vector<8x128xf32> to vector<8x128xbf16>
    %158 = arith.mulf %157, %157 : vector<8x128xbf16>
    %159 = arith.mulf %157, %158 : vector<8x128xbf16>
    %cst_70 = arith.constant 4.467770e-02 : bf16
    %160 = vector.broadcast %cst_70 : bf16 to vector<8x128xbf16>
    %161 = arith.mulf %160, %159 : vector<8x128xbf16>
    %162 = arith.addf %157, %161 : vector<8x128xbf16>
    %cst_71 = arith.constant 7.968750e-01 : bf16
    %163 = vector.broadcast %cst_71 : bf16 to vector<8x128xbf16>
    %164 = arith.mulf %163, %162 : vector<8x128xbf16>
    %165 = math.tanh %164 : vector<8x128xbf16>
    %cst_72 = arith.constant 1.000000e+00 : bf16
    %166 = vector.broadcast %cst_72 : bf16 to vector<8x128xbf16>
    %167 = arith.addf %166, %165 : vector<8x128xbf16>
    %cst_73 = arith.constant 5.000000e-01 : bf16
    %168 = vector.broadcast %cst_73 : bf16 to vector<8x128xbf16>
    %169 = arith.mulf %168, %167 : vector<8x128xbf16>
    %170 = arith.mulf %157, %169 : vector<8x128xbf16>
    %c0_74 = arith.constant 0 : index
    %c0_75 = arith.constant 0 : index
    %171 = vector.load %arg7[%c0_74, %c0_75] : memref<128x128xbf16, #tpu.memory_space<vmem>>, vector<128x128xbf16>
    %cst_76 = arith.constant dense<0.000000e+00> : vector<8x128xf32>
    %172 = tpu.matmul %170, %171, %cst_76 {dimension_numbers = #tpu.dot_dimension_numbers<[1], [0], [0], [1], [0, 0, 1, 1], [], []>} : vector<8x128xbf16>, vector<128x128xbf16>, vector<8x128xf32> -> vector<8x128xf32>
    %c0_77 = arith.constant 0 : index
    %c2944 = arith.constant 2944 : index
    %173 = vector.load %arg2[%c0_77, %c2944] : memref<1x3072xf32, #tpu.memory_space<vmem>>, vector<1x128xf32>
    %174 = vector.broadcast %173 : vector<1x128xf32> to vector<8x128xf32>
    %175 = arith.addf %172, %174 : vector<8x128xf32>
    %c0_78 = arith.constant 0 : index
    %c0_79 = arith.constant 0 : index
    %176 = vector.load %arg8[%c0_78, %c0_79] : memref<8x128xf32, #tpu.memory_space<vmem>>, vector<8x128xf32>
    tpu.vector_store %arg8[%c0_78, %c0_79], %175 {strides = array<i32>} : memref<8x128xf32, #tpu.memory_space<vmem>>, vector<8x128xf32>,
    return
  }
  func.func @transform_0(%arg0: i32) -> (i32, i32) {
    %c0_i32 = arith.constant 0 : i32
    %c0_i32_0 = arith.constant 0 : i32
    return %arg0, %c0_i32 : i32, i32
  }
  func.func @transform_1(%arg0: i32) -> (i32, i32) {
    %c0_i32 = arith.constant 0 : i32
    %c0_i32_0 = arith.constant 0 : i32
    %c0_i32_1 = arith.constant 0 : i32
    return %c0_i32, %c0_i32_0 : i32, i32
  }
  func.func @transform_2(%arg0: i32) -> (i32, i32) {
    %c0_i32 = arith.constant 0 : i32
    %c0_i32_0 = arith.constant 0 : i32
    %c0_i32_1 = arith.constant 0 : i32
    return %c0_i32, %c0_i32_0 : i32, i32
  }
  func.func @transform_3(%arg0: i32) -> (i32, i32) {
    %c0_i32 = arith.constant 0 : i32
    %c0_i32_0 = arith.constant 0 : i32
    %c0_i32_1 = arith.constant 0 : i32
    return %c0_i32, %c0_i32_0 : i32, i32
  }
  func.func @transform_4(%arg0: i32) -> (i32, i32, i32) {
    %c0_i32 = arith.constant 0 : i32
    %c0_i32_0 = arith.constant 0 : i32
    %c0_i32_1 = arith.constant 0 : i32
    %c0_i32_2 = arith.constant 0 : i32
    return %c0_i32, %c0_i32_0, %c0_i32_1 : i32, i32, i32
  }
  func.func @transform_5(%arg0: i32) -> (i32, i32) {
    %c0_i32 = arith.constant 0 : i32
    %c0_i32_0 = arith.constant 0 : i32
    %c0_i32_1 = arith.constant 0 : i32
    return %c0_i32, %c0_i32_0 : i32, i32
  }
  func.func @transform_6(%arg0: i32) -> (i32, i32) {
    %c0_i32 = arith.constant 0 : i32
    %c0_i32_0 = arith.constant 0 : i32
    %c0_i32_1 = arith.constant 0 : i32
    return %c0_i32, %c0_i32_0 : i32, i32
  }
  func.func @transform_7(%arg0: i32) -> (i32, i32) {
    %c0_i32 = arith.constant 0 : i32
    %c0_i32_0 = arith.constant 0 : i32
    return %arg0, %c0_i32 : i32, i32
  }
}

</mosaic_0001>

<bundles_post_ra>
// kernel: deep_resnet_forward.1
= control target key start
LH: loop header
LB: loop body
LE: loop exit
PB: predicated region body
PF: predicated region fallthrough
CT: control target
= control target key end

     0   :  { %12 = vsyncpa [#allocation3], 0  ;;  %s4486_s0 = inlined_call_operand.hbm [shape: f32[8,32], index: 0, kind: input, shape index: {}]   ;;  %s4487_s1 = inlined_call_operand.hbm [shape: f32[1,3072], index: 1, kind: input, shape index: {}]   ;;  %s4488_s2 = inlined_call_operand.hbm [shape: bf16[32,512], index: 2, kind: input, shape index: {}]   ;;  %s4489_s3 = inlined_call_operand.hbm [shape: bf16[512,256], index: 3, kind: input, shape index: {}]   ;;  %s4490_s4 = inlined_call_operand.hbm [shape: bf16[8,256,256], index: 4, kind: input, shape index: {}]   ;;  %s4491_s5 = inlined_call_operand.hbm [shape: bf16[256,128], index: 5, kind: input, shape index: {}]   ;;  %s4492_s6 = inlined_call_operand.hbm [shape: bf16[128,128], index: 6, kind: input, shape index: {}]   ;;  %s4493_s7 = inlined_call_operand.hbm [shape: f32[8,128], index: 7, kind: output, shape index: {}]  }
   0x1   :  { %13 = vsyncpa [#allocation6], 0 }
   0x2   :  { %14 = vsyncpa [#allocation9], 0 }
   0x3   :  { %15 = vsyncpa [#allocation12], 0 }
   0x4   :  { %16 = vsyncpa [#allocation4], 0  ;;  %s4337_s24 = smov [#allocation5]   ;;  %s4338_s26 = smov [#allocation8]  }
   0x5   :  { %s33_s25 = sshll.u32 %s4337_s24, 4  ;;  %s54_s27 = sshll.u32 %s4338_s26, 4  ;;  %s34_s25 = int_to_ptr.vmem [resolvable:$true] %s33_s25  ;;  %s55_s27 = int_to_ptr.vmem [resolvable:$true] %s54_s27 }
   0x6   :  { %s4175_s28 = scalar_lea.vmem %s34_s25, 384  ;;  %p4180_p1 = scmp.lt.s32.totalorder %s34_s25, %s34_s25 }
   0x7   :  { %p4176_p0 = scmp.ne.s32.totalorder %s34_s25, %s4175_s28  ;;  %p4181_p2 = scmp.lt.s32.totalorder %s4175_s28, %s4175_s28 }
   0x9   :  { %p4182_p3 = por %p4181_p2, %p4180_p1 }
   0xb   :  { %p4183_p4 = pnand %p4182_p3, %p4176_p0 }
   0xd   :  { %4186 = shalt.err (!%p4183_p4)
}
   0xe   :  { %36 = dma.hbm_to_vmem [thread:$0]  %s4487_s1, 384, %s34_s25, [#allocation6]  }
   0xf   :  { %s4195_s8 = scalar_lea.vmem %s55_s27, 8192  ;;  %p4200_p6 = scmp.lt.s32.totalorder %s55_s27, %s55_s27 }
  0x10   :  { %p4196_p5 = scmp.ne.s32.totalorder %s55_s27, %s4195_s8  ;;  %p4201_p7 = scmp.lt.s32.totalorder %s4195_s8, %s4195_s8 }
  0x12   :  { %p4202_p8 = por %p4201_p7, %p4200_p6 }
  0x14   :  { %p4203_p9 = pnand %p4202_p8, %p4196_p5 }
  0x16   :  { %4206 = shalt.err (!%p4203_p9)
}
  0x17   :  { %s4339_s9 = smov 128   ;;  %s4340_s10 = smov 8  }
  0x18   :  { %60 = dma.hbm_to_vmem [thread:$0]  %s4489_s3, 8192, %s55_s27, [#allocation9], %s4339_s9, %s4339_s9, %s4340_s10  }
  0x19   :  { %s4341_s13 = smov [#allocation11]  }
  0x1a   :  { %s78_s14 = sshll.u32 %s4341_s13, 4  ;;  %s79_s14 = int_to_ptr.vmem [resolvable:$true] %s78_s14 }
  0x1b   :  { %s4215_s1 = scalar_lea.vmem %s79_s14, 2048  ;;  %p4220_p11 = scmp.lt.s32.totalorder %s79_s14, %s79_s14 }
  0x1c   :  { %p4216_p10 = scmp.ne.s32.totalorder %s79_s14, %s4215_s1  ;;  %p4221_p12 = scmp.lt.s32.totalorder %s4215_s1, %s4215_s1 }
  0x1e   :  { %p4222_p13 = por %p4221_p12, %p4220_p11 }
  0x20   :  { %p4223_p0 = pnand %p4222_p13, %p4216_p10 }
  0x22   :  { %4226 = shalt.err (!%p4223_p0)
}
  0x23   :  { %s4342_s15 = smov 64   ;;  %s4343_s16 = smov 4  }
  0x24   :  { %84 = dma.hbm_to_vmem [thread:$0]  %s4491_s5, 2048, %s79_s14, [#allocation12], %s4342_s15, %s4342_s15, %s4343_s16  }
  0x25   :  { %s4344_s3 = smov [#allocation2]   ;;  %s4345_s20 = smov [#allocation7]  }
  0x26   :  { %s23_s19 = sshll.u32 %s4344_s3, 4  ;;  %s42_s21 = sshll.u32 %s4345_s20, 4  ;;  %s24_s19 = int_to_ptr.vmem [resolvable:$true] %s23_s19  ;;  %s43_s21 = int_to_ptr.vmem [resolvable:$true] %s42_s21 }
  0x27   :  { %s4235_s22 = scalar_lea.vmem %s24_s19, 128  ;;  %p4240_p2 = scmp.lt.s32.totalorder %s24_s19, %s24_s19 }
  0x28   :  { %p4236_p1 = scmp.ne.s32.totalorder %s24_s19, %s4235_s22  ;;  %p4241_p3 = scmp.lt.s32.totalorder %s4235_s22, %s4235_s22 }
  0x2a   :  { %p4242_p4 = por %p4241_p3, %p4240_p2 }
  0x2c   :  { %p4243_p5 = pnand %p4242_p4, %p4236_p1 }
  0x2e   :  { %4246 = shalt.err (!%p4243_p5)
}
  0x2f   :  { %26 = dma.hbm_to_vmem [thread:$0]  %s4486_s0, 128, %s24_s19, [#allocation3]  }
  0x30   :  { %s4255_s25 = scalar_lea.vmem %s43_s21, 1024  ;;  %p4260_p7 = scmp.lt.s32.totalorder %s43_s21, %s43_s21 }
  0x31   :  { %p4256_p6 = scmp.ne.s32.totalorder %s43_s21, %s4255_s25  ;;  %p4261_p8 = scmp.lt.s32.totalorder %s4255_s25, %s4255_s25 }
  0x33   :  { %p4262_p9 = por %p4261_p8, %p4260_p7 }
  0x35   :  { %p4263_p10 = pnand %p4262_p9, %p4256_p6 }
  0x37   :  { %4266 = shalt.err (!%p4263_p10)
}
  0x38   :  { %s4346_s5 = smov 256   ;;  %s4347_s26 = smov 16  }
  0x39   :  { %48 = dma.hbm_to_vmem [thread:$0]  %s4488_s2, 1024, %s43_s21, [#allocation6], %s4346_s5, %s4346_s5, %s4347_s26  }
  0x3a   :  { %s4348_s29 = smov [#allocation10]   ;;  %s4349_s8 = smov [#allocation13]  }
  0x3b   :  { %s66_s30 = sshll.u32 %s4348_s29, 4  ;;  %s90_s11 = sshll.u32 %s4349_s8, 4  ;;  %s67_s30 = int_to_ptr.vmem [resolvable:$true] %s66_s30  ;;  %s91_s11 = int_to_ptr.vmem [resolvable:$true] %s90_s11 }
  0x3c   :  { %s4275_s0 = scalar_lea.vmem %s67_s30, 32768  ;;  %p4280_p12 = scmp.lt.s32.totalorder %s67_s30, %s67_s30 }
  0x3d   :  { %p4276_p11 = scmp.ne.s32.totalorder %s67_s30, %s4275_s0  ;;  %p4281_p13 = scmp.lt.s32.totalorder %s4275_s0, %s4275_s0 }
  0x3f   :  { %p4282_p0 = por %p4281_p13, %p4280_p12 }
  0x41   :  { %p4283_p1 = pnand %p4282_p0, %p4276_p11 }
  0x43   :  { %4286 = shalt.err (!%p4283_p1)
}
  0x44   :  { %72 = dma.hbm_to_vmem [thread:$0]  %s4490_s4, 32768, %s67_s30, [#allocation9], %s4339_s9, %s4339_s9, %s4340_s10  }
  0x45   :  { %s4295_s2 = scalar_lea.vmem %s91_s11, 1024  ;;  %p4300_p3 = scmp.lt.s32.totalorder %s91_s11, %s91_s11 }
  0x46   :  { %p4296_p2 = scmp.ne.s32.totalorder %s91_s11, %s4295_s2  ;;  %p4301_p4 = scmp.lt.s32.totalorder %s4295_s2, %s4295_s2 }
  0x48   :  { %p4302_p5 = por %p4301_p4, %p4300_p3 }
  0x4a   :  { %p4303_p6 = pnand %p4302_p5, %p4296_p2 }
  0x4c   :  { %4306 = shalt.err (!%p4303_p6)
}
  0x4d   :  { %96 = dma.hbm_to_vmem [thread:$0]  %s4492_s6, 1024, %s91_s11, [#allocation12], %s4342_s15, %s4342_s15, %s4343_s16  }
  0x4e   :  { %4327 = dma.done.wait [#allocation3], 128  }
  0x4f   :  { %4328 = vsyncadd [#allocation3], 4294967168 }
  0x50   :  { %4329 = dma.done.wait [#allocation6], 1408  }
  0x51   :  { %4330 = vsyncadd [#allocation6], 4294965888 }
  0x52   :  { %4331 = dma.done.wait [#allocation9], 40960  }
  0x53   :  { %4332 = vsyncadd [#allocation9], 4294926336 }
  0x54   :  { %4333 = dma.done.wait [#allocation12], 3072  }
  0x55   :  { %4334 = vsyncadd [#allocation12], 4294964224  ;;  %v4350_v0 = vmov 0   ;;  %v3621_v1 = vld [vmem:[#allocation7 + $0x24] ss:$16 sps:$4 sm:$0xff]   ;;  %vm195_vm0 = vcmask 261120  }
  0x56   :  { %231 = vmatprep.mubr.bf16.mxu0 %v4350_v0  ;;  %272 = vmatprep.mubr.bf16.mxu1 %v4350_v0  ;;  %v3623_v2 = vld [vmem:[#allocation7 + $0x2c] ss:$16 sps:$4 sm:$0xff]   ;;  %v3625_v3 = vld [vmem:[#allocation7 + $0x20] ss:$16 sps:$4 sm:$0xff]   ;;  %v3626_v4 = vld [vmem:[#allocation7 + $0x28] ss:$16 sps:$4 sm:$0xff]  }
  0x57   :  { %211 = vmatprep.subr.bf16.mxu0 %v3621_v1  ;;  %252 = vmatprep.subr.bf16.mxu1 %v3623_v2  ;;  %v3627_v5 = vld [vmem:[#allocation7 + $0x4] ss:$16 sps:$4 sm:$0xff]   ;;  %v3629_v6 = vld [vmem:[#allocation7 + $0xc] ss:$16 sps:$4 sm:$0xff]   ;;  %v3631_v7 = vld [vmem:[#allocation7] ss:$16 sps:$4 sm:$0xff]  }
  0x58   :  { %212 = vmatpush1.bf16.msra.mxu0 %v3625_v3  ;;  %253 = vmatpush1.bf16.msra.mxu1 %v3626_v4  ;;  %v3632_v8 = vld [vmem:[#allocation7 + $0x8] ss:$16 sps:$4 sm:$0xff]   ;;  %v123_v9 = vld [vmem:[#allocation2] sm:$0xff]  ;;  %v3635_v11 = vld [vmem:[#allocation8 + $0x74] ss:$8 sps:$4 sm:$0xff]   ;;  %vm4352_vm1 = vmmov 0  }
  0x59   :  { %213 = vmatprep.subr.bf16.mxu0 %v3627_v5  ;;  %254 = vmatprep.subr.bf16.mxu1 %v3629_v6  ;;  %v3633_v10 = vld [vmem:[#allocation8 + $0x70] ss:$8 sps:$4 sm:$0xff]   ;;  %v124_v12 = vpack.c.bf16 %v123_v9, %v123_v9  ;;  %v3638_v14 = vld [vmem:[#allocation8 + $0x174] ss:$8 sps:$4 sm:$0xff]   ;;  %v3641_v15 = vld [vmem:[#allocation8 + $0x64] ss:$8 sps:$4 sm:$0xff]  }
  0x5a   :  { %v3636_v13 = vld [vmem:[#allocation8 + $0x170] ss:$8 sps:$4 sm:$0xff]   ;;  %v3644_v16 = vld [vmem:[#allocation8 + $0x164] ss:$8 sps:$4 sm:$0xff]   ;;  %v3639_v17 = vld [vmem:[#allocation8 + $0x60] ss:$8 sps:$4 sm:$0xff]  }
  0x5b   :  { %v3642_v18 = vld [vmem:[#allocation8 + $0x160] ss:$8 sps:$4 sm:$0xff]   ;;  %v3647_v19 = vld [vmem:[#allocation8 + $0x54] ss:$8 sps:$4 sm:$0xff]   ;;  %v3645_v21 = vld [vmem:[#allocation8 + $0x50] ss:$8 sps:$4 sm:$0xff]  }
  0x5c   :  { %214 = vmatpush1.bf16.msra.mxu0 %v3631_v7  ;;  %255 = vmatpush1.bf16.msra.mxu1 %v3632_v8  ;;  %v3650_v20 = vld [vmem:[#allocation8 + $0x154] ss:$8 sps:$4 sm:$0xff]   ;;  %v3648_v22 = vld [vmem:[#allocation8 + $0x150] ss:$8 sps:$4 sm:$0xff]   ;;  %v3653_v23 = vld [vmem:[#allocation8 + $0x44] ss:$8 sps:$4 sm:$0xff]  }
  0x5d   :  { %717 = vmatprep.subr.bf16.mxu0 %v3635_v11  ;;  %758 = vmatprep.subr.bf16.mxu1 %v3638_v14  ;;  %v3656_v24 = vld [vmem:[#allocation8 + $0x144] ss:$8 sps:$4 sm:$0xff]   ;;  %v3651_v25 = vld [vmem:[#allocation8 + $0x40] ss:$8 sps:$4 sm:$0xff]   ;;  %v3659_v27 = vld [vmem:[#allocation8 + $0x34] ss:$8 sps:$4 sm:$0xff]  }
  0x5e   :  { %v3654_v26 = vld [vmem:[#allocation8 + $0x140] ss:$8 sps:$4 sm:$0xff]   ;;  %v3662_v28 = vld [vmem:[#allocation8 + $0x134] ss:$8 sps:$4 sm:$0xff]   ;;  %v3657_v29 = vld [vmem:[#allocation8 + $0x30] ss:$8 sps:$4 sm:$0xff]  }
  0x5f   :  { %3205 = vmatmul.mubr.msk.bf16.vlgmr.msra.gmra.mxu0 %vm195_vm0, %v124_v12  ;;  %3206 = vmatmul.mubr.msk.bf16.vlgmr.msra.gmra.mxu1 %vm195_vm0, %v124_v12  ;;  %v3660_v30 = vld [vmem:[#allocation8 + $0x130] ss:$8 sps:$4 sm:$0xff]   ;;  %v3665_v31 = vld [vmem:[#allocation8 + $0x24] ss:$8 sps:$4 sm:$0xff]   ;;  %v3663_v33 = vld [vmem:[#allocation8 + $0x20] ss:$8 sps:$4 sm:$0xff]   ;;  %v135_v12 = vlaneseq }
  0x60   :  { %718 = vmatpush1.bf16.msra.mxu0 %v3633_v10  ;;  %759 = vmatpush1.bf16.msra.mxu1 %v3636_v13  ;;  %v3668_v32 = vld [vmem:[#allocation8 + $0x124] ss:$8 sps:$4 sm:$0xff]   ;;  %v3666_v34 = vld [vmem:[#allocation8 + $0x120] ss:$8 sps:$4 sm:$0xff]   ;;  %v3671_v35 = vld [vmem:[#allocation8 + $0x14] ss:$8 sps:$4 sm:$0xff]  }
  0x61   :  { %719 = vmatprep.subr.bf16.mxu0 %v3641_v15  ;;  %760 = vmatprep.subr.bf16.mxu1 %v3644_v16  ;;  %v3674_v36 = vld [vmem:[#allocation8 + $0x114] ss:$8 sps:$4 sm:$0xff]   ;;  %v3669_v37 = vld [vmem:[#allocation8 + $0x10] ss:$8 sps:$4 sm:$0xff]   ;;  %v3677_v39 = vld [vmem:[#allocation8 + $0x4] ss:$8 sps:$4 sm:$0xff]  }
  0x62   :  { %v3672_v38 = vld [vmem:[#allocation8 + $0x110] ss:$8 sps:$4 sm:$0xff]   ;;  %v3680_v40 = vld [vmem:[#allocation8 + $0x104] ss:$8 sps:$4 sm:$0xff]   ;;  %v3675_v41 = vld [vmem:[#allocation8] ss:$8 sps:$4 sm:$0xff]  }
  0x63   :  { %v3678_v42 = vld [vmem:[#allocation8 + $0x100] ss:$8 sps:$4 sm:$0xff]   ;;  %v3683_v43 = vld [vmem:[#allocation8 + $0xf4] ss:$8 sps:$4 sm:$0xff]   ;;  %v3681_v45 = vld [vmem:[#allocation8 + $0xf0] ss:$8 sps:$4 sm:$0xff]  }
  0x64   :  { %720 = vmatpush1.bf16.msra.mxu0 %v3639_v17  ;;  %761 = vmatpush1.bf16.msra.mxu1 %v3642_v18  ;;  %v3686_v44 = vld [vmem:[#allocation8 + $0x1f4] ss:$8 sps:$4 sm:$0xff]   ;;  %v3684_v46 = vld [vmem:[#allocation8 + $0x1f0] ss:$8 sps:$4 sm:$0xff]   ;;  %v3689_v47 = vld [vmem:[#allocation8 + $0xe4] ss:$8 sps:$4 sm:$0xff]  }
  0x65   :  { %721 = vmatprep.subr.bf16.mxu0 %v3647_v19  ;;  %762 = vmatprep.subr.bf16.mxu1 %v3650_v20  ;;  %v3692_v48 = vld [vmem:[#allocation8 + $0x1e4] ss:$8 sps:$4 sm:$0xff]   ;;  %v3687_v49 = vld [vmem:[#allocation8 + $0xe0] ss:$8 sps:$4 sm:$0xff]   ;;  %v3695_v51 = vld [vmem:[#allocation8 + $0xd4] ss:$8 sps:$4 sm:$0xff]  }
  0x66   :  { %v3690_v50 = vld [vmem:[#allocation8 + $0x1e0] ss:$8 sps:$4 sm:$0xff]   ;;  %v3698_v52 = vld [vmem:[#allocation8 + $0x1d4] ss:$8 sps:$4 sm:$0xff]   ;;  %v3693_v53 = vld [vmem:[#allocation8 + $0xd0] ss:$8 sps:$4 sm:$0xff]  }
  0x67   :  { %v3696_v54 = vld [vmem:[#allocation8 + $0x1d0] ss:$8 sps:$4 sm:$0xff]   ;;  %v3699_v55 = vld [vmem:[#allocation8 + $0xc0] ss:$8 sps:$4 sm:$0xff]   ;;  %v3701_v56 = vld [vmem:[#allocation8 + $0xc4] ss:$8 sps:$4 sm:$0xff]  }
  0x68   :  { %722 = vmatpush1.bf16.msra.mxu0 %v3645_v21  ;;  %763 = vmatpush1.bf16.msra.mxu1 %v3648_v22  ;;  %v3702_v57 = vld [vmem:[#allocation8 + $0x1c0] ss:$8 sps:$4 sm:$0xff]   ;;  %v3704_v58 = vld [vmem:[#allocation8 + $0x1c4] ss:$8 sps:$4 sm:$0xff]   ;;  %v3707_v59 = vld [vmem:[#allocation8 + $0xb4] ss:$8 sps:$4 sm:$0xff]  }
  0x69   :  { %723 = vmatprep.subr.bf16.mxu0 %v3653_v23  ;;  %764 = vmatprep.subr.bf16.mxu1 %v3656_v24  ;;  %v3710_v60 = vld [vmem:[#allocation8 + $0x1b4] ss:$8 sps:$4 sm:$0xff]   ;;  %v3705_v61 = vld [vmem:[#allocation8 + $0xb0] ss:$8 sps:$4 sm:$0xff]   ;;  %v3713_v63 = vld [vmem:[#allocation8 + $0xa4] ss:$8 sps:$4 sm:$0xff]  }
  0x6a   :  { %v3708_v62 = vld [vmem:[#allocation8 + $0x1b0] ss:$8 sps:$4 sm:$0xff]   ;;  %v3711_v0 = vld [vmem:[#allocation8 + $0xa0] ss:$8 sps:$4 sm:$0xff]   ;;  %v3716_v1 = vld [vmem:[#allocation8 + $0x1a4] ss:$8 sps:$4 sm:$0xff]  }
  0x6b   :  { %v3714_v2 = vld [vmem:[#allocation8 + $0x1a0] ss:$8 sps:$4 sm:$0xff]   ;;  %v3719_v3 = vld [vmem:[#allocation8 + $0x94] ss:$8 sps:$4 sm:$0xff]   ;;  %v3717_v5 = vld [vmem:[#allocation8 + $0x90] ss:$8 sps:$4 sm:$0xff]  }
  0x6c   :  { %724 = vmatpush1.bf16.msra.mxu0 %v3651_v25  ;;  %765 = vmatpush1.bf16.msra.mxu1 %v3654_v26  ;;  %v3722_v4 = vld [vmem:[#allocation8 + $0x194] ss:$8 sps:$4 sm:$0xff]   ;;  %v3720_v6 = vld [vmem:[#allocation8 + $0x190] ss:$8 sps:$4 sm:$0xff]   ;;  %v3725_v7 = vld [vmem:[#allocation8 + $0x84] ss:$8 sps:$4 sm:$0xff]  }
  0x6d   :  { %725 = vmatprep.subr.bf16.mxu0 %v3659_v27  ;;  %766 = vmatprep.subr.bf16.mxu1 %v3662_v28  ;;  %v3728_v8 = vld [vmem:[#allocation8 + $0x184] ss:$8 sps:$4 sm:$0xff]   ;;  %v3723_v9 = vld [vmem:[#allocation8 + $0x80] ss:$8 sps:$4 sm:$0xff]   ;;  %v3731_v11 = vld [vmem:[#allocation10 + $0x74] ss:$8 sps:$4 sm:$0xff]  }
  0x6e   :  { %v3726_v10 = vld [vmem:[#allocation8 + $0x180] ss:$8 sps:$4 sm:$0xff]   ;;  %v136_v13 = vshrl.u32 %v135_v12, 7  ;;  %s4353_s4 = smov [#allocation14]  }
  0x6f   :  { %v133_v16 = vld [vmem:[#allocation5] sm:$0xf]  ;;  %s3185_s6 = sshll.u32 %s4353_s4, 4  ;;  %s3186_s6 = int_to_ptr.vmem [resolvable:$true] %s3185_s6 }
  0x70   :  { %726 = vmatpush1.bf16.msra.mxu0 %v3657_v29  ;;  %767 = vmatpush1.bf16.msra.mxu1 %v3660_v30  ;;  %v4427_v14 = vsub.s32 0, %v136_v13  ;;  %v145_v15 = vsub.s32 2, %v136_v13  ;;  %v4429_v17 = vsub.s32 1, %v136_v13  ;;  %v149_v18 = vsub.s32 3, %v136_v13  ;;  %v3732_v13 = vld [vmem:[#allocation10 + $0x60] ss:$8 sps:$4 sm:$0xff]   ;;  %p4312_p8 = scmp.lt.s32.totalorder %s3186_s6, %s3186_s6 }
  0x71   :  { %727 = vmatprep.subr.bf16.mxu0 %v3665_v31  ;;  %768 = vmatprep.subr.bf16.mxu1 %v3668_v32  ;;  %s4307_s9 = scalar_lea.vmem %s3186_s6, 128 }
  0x72   :  { %v138_v19 = vrot.slane %v133_v16, %v4427_v14  ;;  %v146_v20 = vrot.slane %v133_v16, %v145_v15  ;;  %v142_v21 = vrot.slane %v133_v16, %v4429_v17  ;;  %v150_v22 = vrot.slane %v133_v16, %v149_v18  ;;  %v3737_v15 = vld [vmem:[#allocation10 + $0x54] ss:$8 sps:$4 sm:$0xff]   ;;  %v3735_v16 = vld [vmem:[#allocation10 + $0x50] ss:$8 sps:$4 sm:$0xff]   ;;  %v3740_v18 = vld [vmem:[#allocation10 + $0x44] ss:$8 sps:$4 sm:$0xff]   ;;  %p4308_p7 = scmp.ne.s32.totalorder %s3186_s6, %s4307_s9  ;;  %p4313_p9 = scmp.lt.s32.totalorder %s4307_s9, %s4307_s9 }
  0x74   :  { %728 = vmatpush1.bf16.msra.mxu0 %v3663_v33  ;;  %769 = vmatpush1.bf16.msra.mxu1 %v3666_v34  ;;  %p4314_p10 = por %p4313_p9, %p4312_p8 }
  0x75   :  { %729 = vmatprep.subr.bf16.mxu0 %v3671_v35  ;;  %770 = vmatprep.subr.bf16.mxu1 %v3674_v36 }
  0x76   :  { %p4315_p11 = pnand %p4314_p10, %p4308_p7 }
  0x78   :  { %730 = vmatpush1.bf16.msra.mxu0 %v3669_v37  ;;  %771 = vmatpush1.bf16.msra.mxu1 %v3672_v38 }
  0x79   :  { %731 = vmatprep.subr.bf16.mxu0 %v3677_v39  ;;  %772 = vmatprep.subr.bf16.mxu1 %v3680_v40 }
  0x7c   :  { %732 = vmatpush1.bf16.msra.mxu0 %v3675_v41  ;;  %773 = vmatpush1.bf16.msra.mxu1 %v3678_v42 }
  0x7d   :  { %733 = vmatprep.subr.bf16.mxu0 %v3683_v43  ;;  %774 = vmatprep.subr.bf16.mxu1 %v3686_v44 }
  0x80   :  { %734 = vmatpush2.bf16.msra.mxu0 %v3681_v45  ;;  %775 = vmatpush2.bf16.msra.mxu1 %v3684_v46 }
  0x81   :  { %735 = vmatprep.subr.bf16.mxu0 %v3689_v47  ;;  %776 = vmatprep.subr.bf16.mxu1 %v3692_v48 }
  0x84   :  { %736 = vmatpush2.bf16.msra.mxu0 %v3687_v49  ;;  %777 = vmatpush2.bf16.msra.mxu1 %v3690_v50 }
  0x85   :  { %737 = vmatprep.subr.bf16.mxu0 %v3695_v51  ;;  %778 = vmatprep.subr.bf16.mxu1 %v3698_v52 }
  0x88   :  { %738 = vmatpush2.bf16.msra.mxu0 %v3693_v53  ;;  %779 = vmatpush2.bf16.msra.mxu1 %v3696_v54 }
  0x89   :  { %739 = vmatprep.subr.bf16.mxu0 %v3701_v56  ;;  %780 = vmatprep.subr.bf16.mxu1 %v3704_v58 }
  0x8c   :  { %740 = vmatpush2.bf16.msra.mxu0 %v3699_v55  ;;  %781 = vmatpush2.bf16.msra.mxu1 %v3702_v57 }
  0x8d   :  { %741 = vmatprep.subr.bf16.mxu0 %v3707_v59  ;;  %782 = vmatprep.subr.bf16.mxu1 %v3710_v60 }
  0x90   :  { %742 = vmatpush2.bf16.msra.mxu0 %v3705_v61  ;;  %783 = vmatpush2.bf16.msra.mxu1 %v3708_v62 }
  0x91   :  { %743 = vmatprep.subr.bf16.mxu0 %v3713_v63  ;;  %784 = vmatprep.subr.bf16.mxu1 %v3716_v1 }
  0x94   :  { %744 = vmatpush2.bf16.msra.mxu0 %v3711_v0  ;;  %785 = vmatpush2.bf16.msra.mxu1 %v3714_v2 }
  0x95   :  { %745 = vmatprep.subr.bf16.mxu0 %v3719_v3  ;;  %786 = vmatprep.subr.bf16.mxu1 %v3722_v4 }
  0x98   :  { %746 = vmatpush2.bf16.msra.mxu0 %v3717_v5  ;;  %787 = vmatpush2.bf16.msra.mxu1 %v3720_v6 }
  0x99   :  { %747 = vmatprep.subr.bf16.mxu0 %v3725_v7  ;;  %788 = vmatprep.subr.bf16.mxu1 %v3728_v8  ;;  %v3729_v8 = vld [vmem:[#allocation10 + $0x70] ss:$8 sps:$4 sm:$0xff]  }
  0x9c   :  { %748 = vmatpush2.bf16.msra.mxu0 %v3723_v9  ;;  %789 = vmatpush2.bf16.msra.mxu1 %v3726_v10 }
  0x9d   :  { %1023 = vmatprep.subr.bf16.mxu0 %v3731_v11  ;;  %v3734_v11 = vld [vmem:[#allocation10 + $0x64] ss:$8 sps:$4 sm:$0xff]  }
 0x11f   :  { %v233_v23 = vpop.f32.mrf.mxu0  ;;  %v274_v24 = vpop.f32.mrf.mxu1 }
 0x120   :  { %v234_v25 = vadd.f32 %v233_v23, %v138_v19  ;;  %v275_v26 = vadd.f32 %v274_v24, %v146_v20  ;;  %v3738_v19 = vld [vmem:[#allocation10 + $0x40] ss:$8 sps:$4 sm:$0xff]   ;;  %v3743_v20 = vld [vmem:[#allocation10 + $0x34] ss:$8 sps:$4 sm:$0xff]  }
 0x121   :  { %v235_v27 = vpop.f32.mrf.mxu0  ;;  %v276_v28 = vpop.f32.mrf.mxu1  ;;  %v3744_v23 = vld [vmem:[#allocation10 + $0x20] ss:$8 sps:$4 sm:$0xff]   ;;  %v3749_v24 = vld [vmem:[#allocation10 + $0x14] ss:$8 sps:$4 sm:$0xff]  }
 0x122   :  { %v281_v29 = vpack.c.bf16 %v234_v25, %v234_v25  ;;  %v283_v30 = vpack.c.bf16 %v275_v26, %v275_v26  ;;  %v236_v31 = vadd.f32 %v235_v27, %v142_v21  ;;  %v277_v32 = vadd.f32 %v276_v28, %v150_v22  ;;  %v3741_v21 = vld [vmem:[#allocation10 + $0x30] ss:$8 sps:$4 sm:$0xff]   ;;  %v3746_v22 = vld [vmem:[#allocation10 + $0x24] ss:$8 sps:$4 sm:$0xff]   ;;  %v3750_v27 = vld [vmem:[#allocation10] ss:$8 sps:$4 sm:$0xff]  }
 0x123   :  { %v237_v33 = vpop.f32.mrf.mxu0  ;;  %v278_v34 = vpop.f32.mrf.mxu1  ;;  %v3747_v25 = vld [vmem:[#allocation10 + $0x10] ss:$8 sps:$4 sm:$0xff]   ;;  %v3752_v26 = vld [vmem:[#allocation10 + $0x4] ss:$8 sps:$4 sm:$0xff]   ;;  %v3755_v28 = vld [vmem:[#allocation10 + $0xf4] ss:$8 sps:$4 sm:$0xff]  }
 0x124   :  { %v285_v35 = vmul.bf16 %v281_v29, %v281_v29  ;;  %v287_v36 = vmul.bf16 %v283_v30, %v283_v30  ;;  %v282_v37 = vpack.c.bf16 %v236_v31, %v236_v31  ;;  %v284_v38 = vpack.c.bf16 %v277_v32, %v277_v32  ;;  %v3756_v31 = vld [vmem:[#allocation10 + $0xe0] ss:$8 sps:$4 sm:$0xff]   ;;  %v3761_v32 = vld [vmem:[#allocation10 + $0xd4] ss:$8 sps:$4 sm:$0xff]   ;;  %v3759_v33 = vld [vmem:[#allocation10 + $0xd0] ss:$8 sps:$4 sm:$0xff]  }
 0x125   :  { %v238_v39 = vpop.f32.mrf.mxu0  ;;  %v279_v40 = vpop.f32.mrf.mxu1  ;;  %v3762_v34 = vld [vmem:[#allocation10 + $0xc0] ss:$8 sps:$4 sm:$0xff]  }
 0x126   :  { %v289_v41 = vmul.bf16 %v285_v35, %v281_v29  ;;  %v291_v42 = vmul.bf16 %v287_v36, %v283_v30  ;;  %v286_v43 = vmul.bf16 %v282_v37, %v282_v37  ;;  %v288_v44 = vmul.bf16 %v284_v38, %v284_v38  ;;  %v3764_v35 = vld [vmem:[#allocation10 + $0xc4] ss:$8 sps:$4 sm:$0xff]   ;;  %v3767_v36 = vld [vmem:[#allocation10 + $0xb4] ss:$8 sps:$4 sm:$0xff]   ;;  %v3768_v39 = vld [vmem:[#allocation10 + $0xa0] ss:$8 sps:$4 sm:$0xff]  }
 0x127   :  { %v3773_v40 = vld [vmem:[#allocation10 + $0x94] ss:$8 sps:$4 sm:$0xff]  }
 0x128   :  { %v293_v45 = vmul.bf16 1027030327, %v289_v41  ;;  %v295_v46 = vmul.bf16 1027030327, %v291_v42  ;;  %v290_v47 = vmul.bf16 %v286_v43, %v282_v37  ;;  %v292_v48 = vmul.bf16 %v288_v44, %v284_v38  ;;  %v3771_v41 = vld [vmem:[#allocation10 + $0x90] ss:$8 sps:$4 sm:$0xff]  }
 0x129   :  { %v3776_v42 = vld [vmem:[#allocation10 + $0x84] ss:$8 sps:$4 sm:$0xff]   ;;  %v3774_v43 = vld [vmem:[#allocation10 + $0x80] ss:$8 sps:$4 sm:$0xff]   ;;  %v3777_v44 = vld [vmem:[#allocation10 + $0x170] ss:$8 sps:$4 sm:$0xff]  }
 0x12a   :  { %v297_v49 = vadd.bf16 %v293_v45, %v281_v29  ;;  %v299_v50 = vadd.bf16 %v295_v46, %v283_v30  ;;  %v294_v51 = vmul.bf16 1027030327, %v290_v47  ;;  %v296_v52 = vmul.bf16 1027030327, %v292_v48  ;;  %v3779_v45 = vld [vmem:[#allocation10 + $0x174] ss:$8 sps:$4 sm:$0xff]  }
 0x12b   :  { %v3782_v46 = vld [vmem:[#allocation10 + $0x164] ss:$8 sps:$4 sm:$0xff]   ;;  %1289 = vmatprep.subr.bf16.mxu1 %v3779_v45  ;;  %v3780_v47 = vld [vmem:[#allocation10 + $0x160] ss:$8 sps:$4 sm:$0xff]   ;;  %v3785_v48 = vld [vmem:[#allocation10 + $0x154] ss:$8 sps:$4 sm:$0xff]  }
 0x12c   :  { %v301_v53 = vmul.bf16 1061961548, %v297_v49  ;;  %v303_v54 = vmul.bf16 1061961548, %v299_v50  ;;  %v298_v55 = vadd.bf16 %v294_v51, %v282_v37  ;;  %v300_v56 = vadd.bf16 %v296_v52, %v284_v38  ;;  %v3783_v49 = vld [vmem:[#allocation10 + $0x150] ss:$8 sps:$4 sm:$0xff]  }
 0x12d   :  { %v3788_v50 = vld [vmem:[#allocation10 + $0x144] ss:$8 sps:$4 sm:$0xff]   ;;  %v3786_v51 = vld [vmem:[#allocation10 + $0x140] ss:$8 sps:$4 sm:$0xff]   ;;  %v3791_v52 = vld [vmem:[#allocation10 + $0x134] ss:$8 sps:$4 sm:$0xff]  }
 0x12e   :  { %4137 = vtanh.bf16 %v301_v53  ;;  %v302_v57 = vmul.bf16 1061961548, %v298_v55  ;;  %v304_v58 = vmul.bf16 1061961548, %v300_v56  ;;  %v3789_v53 = vld [vmem:[#allocation10 + $0x130] ss:$8 sps:$4 sm:$0xff]  }
 0x12f   :  { %4139 = vtanh.bf16 %v303_v54  ;;  %v3794_v54 = vld [vmem:[#allocation10 + $0x124] ss:$8 sps:$4 sm:$0xff]   ;;  %v3792_v55 = vld [vmem:[#allocation10 + $0x120] ss:$8 sps:$4 sm:$0xff]   ;;  %v3797_v56 = vld [vmem:[#allocation10 + $0x114] ss:$8 sps:$4 sm:$0xff]  }
 0x130   :  { %4141 = vtanh.bf16 %v302_v57  ;;  %v3795_v57 = vld [vmem:[#allocation10 + $0x110] ss:$8 sps:$4 sm:$0xff]   ;;  %v3821_v45 = vld [vmem:[#allocation10 + $0x194] ss:$8 sps:$4 sm:$0xff]  }
 0x131   :  { %4143 = vtanh.bf16 %v304_v58  ;;  %v385_v58 = vld [vmem:[#allocation5 + $0x4] sm:$0x3] }
 0x13c   :  { %v4138_v59 = vpop.eup %4137 }
 0x13d   :  { %v4140_v60 = vpop.eup %4139  ;;  %v309_v61 = vadd.bf16 1065369472, %v4138_v59  ;;  %v390_v59 = vrot.slane %v385_v58, %v4427_v14 }
 0x13e   :  { %v4142_v62 = vpop.eup %4141  ;;  %v311_v63 = vadd.bf16 1065369472, %v4140_v60  ;;  %v394_v60 = vrot.slane %v385_v58, %v4429_v17  ;;  %v3837_v58 = vld [vmem:[#allocation10 + $0x230] ss:$8 sps:$4 sm:$0xff]  }
 0x13f   :  { %v4144_v0 = vpop.eup %4143  ;;  %v310_v1 = vadd.bf16 1065369472, %v4142_v62  ;;  %v313_v3 = vmul.bf16 1056980736, %v309_v61 }
 0x140   :  { %v312_v2 = vadd.bf16 1065369472, %v4144_v0  ;;  %v315_v5 = vmul.bf16 1056980736, %v311_v63 }
 0x141   :  { %v314_v4 = vmul.bf16 1056980736, %v310_v1  ;;  %v317_v10 = vmul.bf16 %v313_v3, %v281_v29  ;;  %v3753_v29 = vld [vmem:[#allocation10 + $0xf0] ss:$8 sps:$4 sm:$0xff]  }
 0x142   :  { %v316_v6 = vmul.bf16 1056980736, %v312_v2  ;;  %v319_v12 = vmul.bf16 %v315_v5, %v283_v30  ;;  %v3758_v30 = vld [vmem:[#allocation10 + $0xe4] ss:$8 sps:$4 sm:$0xff]  }
 0x143   :  { %v318_v7 = vmul.bf16 %v314_v4, %v282_v37  ;;  %v3765_v37 = vld [vmem:[#allocation10 + $0xb0] ss:$8 sps:$4 sm:$0xff]  }
 0x144   :  { %v320_v9 = vmul.bf16 %v316_v6, %v284_v38  ;;  %v3770_v38 = vld [vmem:[#allocation10 + $0xa4] ss:$8 sps:$4 sm:$0xff]  }
 0x145   :  { %749 = vmatprep.mubr.bf16.mxu0 %v318_v7 }
 0x146   :  { %790 = vmatprep.mubr.bf16.mxu1 %v320_v9  ;;  %750 = vmatmul.mubr.bf16.vlgmr.msra.gmra.mxu0 %v317_v10 }
 0x147   :  { %791 = vmatmul.mubr.bf16.vlgmr.msra.gmra.mxu1 %v319_v12  ;;  %1024 = vmatpush1.bf16.msra.mxu0 %v3729_v8 }
 0x148   :  { %1025 = vmatprep.subr.bf16.mxu0 %v3734_v11  ;;  %1290 = vmatpush1.bf16.msra.mxu1 %v3777_v44  ;;  %v3816_v44 = vld [vmem:[#allocation10 + $0x1a0] ss:$8 sps:$4 sm:$0xff]  }
 0x149   :  { %1291 = vmatprep.subr.bf16.mxu1 %v3782_v46  ;;  %v3819_v46 = vld [vmem:[#allocation10 + $0x190] ss:$8 sps:$4 sm:$0xff]  }
 0x14b   :  { %1026 = vmatpush1.bf16.msra.mxu0 %v3732_v13 }
 0x14c   :  { %1027 = vmatprep.subr.bf16.mxu0 %v3737_v15  ;;  %1292 = vmatpush1.bf16.msra.mxu1 %v3780_v47  ;;  %v3824_v47 = vld [vmem:[#allocation10 + $0x184] ss:$8 sps:$4 sm:$0xff]  }
 0x14d   :  { %1293 = vmatprep.subr.bf16.mxu1 %v3785_v48  ;;  %v3822_v48 = vld [vmem:[#allocation10 + $0x180] ss:$8 sps:$4 sm:$0xff]  }
 0x14f   :  { %1028 = vmatpush1.bf16.msra.mxu0 %v3735_v16 }
 0x150   :  { %1029 = vmatprep.subr.bf16.mxu0 %v3740_v18  ;;  %1294 = vmatpush1.bf16.msra.mxu1 %v3783_v49  ;;  %v3825_v49 = vld [vmem:[#allocation10 + $0x270] ss:$8 sps:$4 sm:$0xff]  }
 0x151   :  { %1295 = vmatprep.subr.bf16.mxu1 %v3788_v50  ;;  %v3827_v50 = vld [vmem:[#allocation10 + $0x274] ss:$8 sps:$4 sm:$0xff]  }
 0x153   :  { %1030 = vmatpush1.bf16.msra.mxu0 %v3738_v19 }
 0x154   :  { %1031 = vmatprep.subr.bf16.mxu0 %v3743_v20  ;;  %1296 = vmatpush1.bf16.msra.mxu1 %v3786_v51  ;;  %v3830_v51 = vld [vmem:[#allocation10 + $0x264] ss:$8 sps:$4 sm:$0xff]  }
 0x155   :  { %1297 = vmatprep.subr.bf16.mxu1 %v3791_v52  ;;  %v3828_v52 = vld [vmem:[#allocation10 + $0x260] ss:$8 sps:$4 sm:$0xff]  }
 0x157   :  { %1032 = vmatpush1.bf16.msra.mxu0 %v3741_v21 }
 0x158   :  { %1033 = vmatprep.subr.bf16.mxu0 %v3746_v22  ;;  %1298 = vmatpush1.bf16.msra.mxu1 %v3789_v53  ;;  %v3833_v53 = vld [vmem:[#allocation10 + $0x254] ss:$8 sps:$4 sm:$0xff]  }
 0x159   :  { %1299 = vmatprep.subr.bf16.mxu1 %v3794_v54  ;;  %v3831_v54 = vld [vmem:[#allocation10 + $0x250] ss:$8 sps:$4 sm:$0xff]  }
 0x15b   :  { %1034 = vmatpush1.bf16.msra.mxu0 %v3744_v23 }
 0x15c   :  { %1035 = vmatprep.subr.bf16.mxu0 %v3749_v24  ;;  %1300 = vmatpush1.bf16.msra.mxu1 %v3792_v55  ;;  %v3836_v55 = vld [vmem:[#allocation10 + $0x244] ss:$8 sps:$4 sm:$0xff]  }
 0x15d   :  { %1301 = vmatprep.subr.bf16.mxu1 %v3797_v56  ;;  %v3834_v56 = vld [vmem:[#allocation10 + $0x240] ss:$8 sps:$4 sm:$0xff]  }
 0x15f   :  { %1036 = vmatpush1.bf16.msra.mxu0 %v3747_v25 }
 0x160   :  { %1037 = vmatprep.subr.bf16.mxu0 %v3752_v26  ;;  %1302 = vmatpush1.bf16.msra.mxu1 %v3795_v57  ;;  %v3839_v57 = vld [vmem:[#allocation10 + $0x234] ss:$8 sps:$4 sm:$0xff]  }
 0x163   :  { %1038 = vmatpush1.bf16.msra.mxu0 %v3750_v27 }
 0x164   :  { %1039 = vmatprep.subr.bf16.mxu0 %v3755_v28 }
 0x167   :  { %1040 = vmatpush2.bf16.msra.mxu0 %v3753_v29 }
 0x168   :  { %1041 = vmatprep.subr.bf16.mxu0 %v3758_v30 }
 0x16b   :  { %1042 = vmatpush2.bf16.msra.mxu0 %v3756_v31  ;;  %v3800_v31 = vld [vmem:[#allocation10 + $0x104] ss:$8 sps:$4 sm:$0xff]  }
 0x16c   :  { %1043 = vmatprep.subr.bf16.mxu0 %v3761_v32  ;;  %v3798_v32 = vld [vmem:[#allocation10 + $0x100] ss:$8 sps:$4 sm:$0xff]   ;;  %1303 = vmatprep.subr.bf16.mxu1 %v3800_v31 }
 0x16d   :  { %1304 = vmatpush1.bf16.msra.mxu1 %v3798_v32 }
 0x16f   :  { %1044 = vmatpush2.bf16.msra.mxu0 %v3759_v33  ;;  %v3803_v33 = vld [vmem:[#allocation10 + $0x1f4] ss:$8 sps:$4 sm:$0xff]  }
 0x170   :  { %1045 = vmatprep.subr.bf16.mxu0 %v3764_v35  ;;  %1305 = vmatprep.subr.bf16.mxu1 %v3803_v33  ;;  %v3806_v35 = vld [vmem:[#allocation10 + $0x1e4] ss:$8 sps:$4 sm:$0xff]  }
 0x173   :  { %1046 = vmatpush2.bf16.msra.mxu0 %v3762_v34  ;;  %v3801_v34 = vld [vmem:[#allocation10 + $0x1f0] ss:$8 sps:$4 sm:$0xff]  }
 0x174   :  { %1047 = vmatprep.subr.bf16.mxu0 %v3767_v36  ;;  %1306 = vmatpush2.bf16.msra.mxu1 %v3801_v34  ;;  %v3804_v36 = vld [vmem:[#allocation10 + $0x1e0] ss:$8 sps:$4 sm:$0xff]  }
 0x175   :  { %1307 = vmatprep.subr.bf16.mxu1 %v3806_v35 }
 0x177   :  { %1048 = vmatpush2.bf16.msra.mxu0 %v3765_v37  ;;  %v3809_v37 = vld [vmem:[#allocation10 + $0x1d4] ss:$8 sps:$4 sm:$0xff]  }
 0x178   :  { %1049 = vmatprep.subr.bf16.mxu0 %v3770_v38  ;;  %1308 = vmatpush2.bf16.msra.mxu1 %v3804_v36  ;;  %v3807_v38 = vld [vmem:[#allocation10 + $0x1d0] ss:$8 sps:$4 sm:$0xff]  }
 0x179   :  { %1309 = vmatprep.subr.bf16.mxu1 %v3809_v37 }
 0x17b   :  { %1050 = vmatpush2.bf16.msra.mxu0 %v3768_v39  ;;  %v3810_v39 = vld [vmem:[#allocation10 + $0x1c0] ss:$8 sps:$4 sm:$0xff]  }
 0x17c   :  { %1051 = vmatprep.subr.bf16.mxu0 %v3773_v40  ;;  %1310 = vmatpush2.bf16.msra.mxu1 %v3807_v38  ;;  %v3812_v40 = vld [vmem:[#allocation10 + $0x1c4] ss:$8 sps:$4 sm:$0xff]  }
 0x17d   :  { %1311 = vmatprep.subr.bf16.mxu1 %v3812_v40 }
 0x17f   :  { %1052 = vmatpush2.bf16.msra.mxu0 %v3771_v41  ;;  %v3815_v41 = vld [vmem:[#allocation10 + $0x1b4] ss:$8 sps:$4 sm:$0xff]  }
 0x180   :  { %1053 = vmatprep.subr.bf16.mxu0 %v3776_v42  ;;  %1312 = vmatpush2.bf16.msra.mxu1 %v3810_v39  ;;  %v3813_v42 = vld [vmem:[#allocation10 + $0x1b0] ss:$8 sps:$4 sm:$0xff]  }
 0x181   :  { %1313 = vmatprep.subr.bf16.mxu1 %v3815_v41 }
 0x183   :  { %1054 = vmatpush2.bf16.msra.mxu0 %v3774_v43  ;;  %v3818_v43 = vld [vmem:[#allocation10 + $0x1a4] ss:$8 sps:$4 sm:$0xff]  }
 0x184   :  { %1314 = vmatpush2.bf16.msra.mxu1 %v3813_v42  ;;  %1539 = vmatprep.subr.bf16.mxu0 %v3827_v50  ;;  %v3873_v50 = vld [vmem:[#allocation10 + $0x370] ss:$8 sps:$4 sm:$0xff]  }
 0x185   :  { %1315 = vmatprep.subr.bf16.mxu1 %v3818_v43 }
 0x188   :  { %1316 = vmatpush2.bf16.msra.mxu1 %v3816_v44 }
 0x189   :  { %1317 = vmatprep.subr.bf16.mxu1 %v3821_v45 }
 0x18c   :  { %1318 = vmatpush2.bf16.msra.mxu1 %v3819_v46  ;;  %v3869_v46 = vld [vmem:[#allocation10 + $0x294] ss:$8 sps:$4 sm:$0xff]  }
 0x18d   :  { %1319 = vmatprep.subr.bf16.mxu1 %v3824_v47  ;;  %v3867_v47 = vld [vmem:[#allocation10 + $0x290] ss:$8 sps:$4 sm:$0xff]  }
 0x190   :  { %1320 = vmatpush2.bf16.msra.mxu1 %v3822_v48  ;;  %v3872_v48 = vld [vmem:[#allocation10 + $0x284] ss:$8 sps:$4 sm:$0xff]  }
 0x206   :  { %v751_v61 = vpop.f32.mrf.mxu0 }
 0x207   :  { %v752_v62 = vadd.f32 %v751_v61, %v390_v59  ;;  %v792_v63 = vpop.f32.mrf.mxu1  ;;  %v3842_v59 = vld [vmem:[#allocation10 + $0x224] ss:$8 sps:$4 sm:$0xff]   ;;  %v3845_v61 = vld [vmem:[#allocation10 + $0x214] ss:$8 sps:$4 sm:$0xff]  }
 0x208   :  { %v753_v0 = vpop.f32.mrf.mxu0 }
 0x209   :  { %v793_v1 = vadd.f32 %v792_v63, %v752_v62  ;;  %v754_v2 = vadd.f32 %v753_v0, %v394_v60  ;;  %v794_v3 = vpop.f32.mrf.mxu1  ;;  %v3840_v60 = vld [vmem:[#allocation10 + $0x220] ss:$8 sps:$4 sm:$0xff]   ;;  %v3843_v62 = vld [vmem:[#allocation10 + $0x210] ss:$8 sps:$4 sm:$0xff]   ;;  %v3848_v63 = vld [vmem:[#allocation10 + $0x204] ss:$8 sps:$4 sm:$0xff]  }
 0x20a   :  { %v755_v4 = vpop.f32.mrf.mxu0  ;;  %v3846_v0 = vld [vmem:[#allocation10 + $0x200] ss:$8 sps:$4 sm:$0xff]  }
 0x20b   :  { %v799_v5 = vpack.c.bf16 %v793_v1, %v793_v1  ;;  %v795_v6 = vadd.f32 %v794_v3, %v754_v2  ;;  %v796_v7 = vpop.f32.mrf.mxu1  ;;  %v3851_v1 = vld [vmem:[#allocation10 + $0x2f4] ss:$8 sps:$4 sm:$0xff]   ;;  %v3849_v2 = vld [vmem:[#allocation10 + $0x2f0] ss:$8 sps:$4 sm:$0xff]   ;;  %v3854_v3 = vld [vmem:[#allocation10 + $0x2e4] ss:$8 sps:$4 sm:$0xff]  }
 0x20c   :  { %v756_v8 = vpop.f32.mrf.mxu0  ;;  %v3852_v4 = vld [vmem:[#allocation10 + $0x2e0] ss:$8 sps:$4 sm:$0xff]   ;;  %v3860_v7 = vld [vmem:[#allocation10 + $0x2c4] ss:$8 sps:$4 sm:$0xff]  }
 0x20d   :  { %v801_v9 = vmul.bf16 %v799_v5, %v799_v5  ;;  %v800_v10 = vpack.c.bf16 %v795_v6, %v795_v6  ;;  %v797_v11 = vpop.f32.mrf.mxu1  ;;  %v3855_v6 = vld [vmem:[#allocation10 + $0x2d0] ss:$8 sps:$4 sm:$0xff]   ;;  %v3858_v8 = vld [vmem:[#allocation10 + $0x2c0] ss:$8 sps:$4 sm:$0xff]  }
 0x20e   :  { %v3866_v11 = vld [vmem:[#allocation10 + $0x2a4] ss:$8 sps:$4 sm:$0xff]  }
 0x20f   :  { %v803_v12 = vmul.bf16 %v801_v9, %v799_v5  ;;  %v802_v13 = vmul.bf16 %v800_v10, %v800_v10  ;;  %v3863_v9 = vld [vmem:[#allocation10 + $0x2b4] ss:$8 sps:$4 sm:$0xff]  }
 0x211   :  { %v805_v15 = vmul.bf16 1027030327, %v803_v12  ;;  %v804_v16 = vmul.bf16 %v802_v13, %v800_v10  ;;  %v3864_v12 = vld [vmem:[#allocation10 + $0x2a0] ss:$8 sps:$4 sm:$0xff]   ;;  %v851_v13 = vld [vmem:[#allocation5 + $0x6] sm:$0x3] }
 0x213   :  { %v807_v18 = vadd.bf16 %v805_v15, %v799_v5  ;;  %v806_v19 = vmul.bf16 1027030327, %v804_v16  ;;  %v856_v15 = vrot.slane %v851_v13, %v4427_v14  ;;  %v860_v16 = vrot.slane %v851_v13, %v4429_v17  ;;  %v3896_v13 = vld [vmem:[#allocation10 + $0x304] ss:$8 sps:$4 sm:$0xff]  }
 0x215   :  { %v809_v20 = vmul.bf16 1061961548, %v807_v18  ;;  %v808_v21 = vadd.bf16 %v806_v19, %v800_v10 }
 0x217   :  { %4145 = vtanh.bf16 %v809_v20  ;;  %v810_v22 = vmul.bf16 1061961548, %v808_v21 }
 0x219   :  { %4147 = vtanh.bf16 %v810_v22 }
 0x225   :  { %v4146_v23 = vpop.eup %4145 }
 0x226   :  { %v813_v24 = vadd.bf16 1065369472, %v4146_v23 }
 0x227   :  { %v4148_v25 = vpop.eup %4147 }
 0x228   :  { %v814_v26 = vadd.bf16 1065369472, %v4148_v25  ;;  %v815_v27 = vmul.bf16 1056980736, %v813_v24 }
 0x22a   :  { %v816_v28 = vmul.bf16 1056980736, %v814_v26  ;;  %v4437_v30 = vmul.bf16 %v815_v27, %v799_v5  ;;  %v3857_v5 = vld [vmem:[#allocation10 + $0x2d4] ss:$8 sps:$4 sm:$0xff]  }
 0x22c   :  { %v4435_v29 = vmul.bf16 %v816_v28, %v800_v10  ;;  %v3861_v10 = vld [vmem:[#allocation10 + $0x2b0] ss:$8 sps:$4 sm:$0xff]  }
 0x22e   :  { %1055 = vmatprep.mubr.bf16.mxu0 %v4435_v29 }
 0x22f   :  { %1056 = vmatmul.mubr.bf16.vlgmr.msra.gmra.mxu0 %v4437_v30 }
 0x230   :  { %1540 = vmatpush1.bf16.msra.mxu0 %v3825_v49  ;;  %v3870_v49 = vld [vmem:[#allocation10 + $0x280] ss:$8 sps:$4 sm:$0xff]  }
 0x231   :  { %1541 = vmatprep.subr.bf16.mxu0 %v3830_v51  ;;  %v3875_v51 = vld [vmem:[#allocation10 + $0x374] ss:$8 sps:$4 sm:$0xff]  }
 0x232   :  { %1805 = vmatprep.subr.bf16.mxu1 %v3875_v51  ;;  %v3950_v51 = vld [vmem:[#allocation10 + $0x4e4] ss:$8 sps:$4 sm:$0xff]  }
 0x234   :  { %1542 = vmatpush1.bf16.msra.mxu0 %v3828_v52  ;;  %v3878_v52 = vld [vmem:[#allocation10 + $0x364] ss:$8 sps:$4 sm:$0xff]  }
 0x235   :  { %1543 = vmatprep.subr.bf16.mxu0 %v3833_v53  ;;  %v3876_v53 = vld [vmem:[#allocation10 + $0x360] ss:$8 sps:$4 sm:$0xff]  }
 0x238   :  { %1544 = vmatpush1.bf16.msra.mxu0 %v3831_v54  ;;  %v3881_v54 = vld [vmem:[#allocation10 + $0x354] ss:$8 sps:$4 sm:$0xff]  }
 0x239   :  { %1545 = vmatprep.subr.bf16.mxu0 %v3836_v55  ;;  %v3879_v55 = vld [vmem:[#allocation10 + $0x350] ss:$8 sps:$4 sm:$0xff]  }
 0x23c   :  { %1546 = vmatpush1.bf16.msra.mxu0 %v3834_v56  ;;  %v3884_v56 = vld [vmem:[#allocation10 + $0x344] ss:$8 sps:$4 sm:$0xff]  }
 0x23d   :  { %1547 = vmatprep.subr.bf16.mxu0 %v3839_v57  ;;  %v3882_v57 = vld [vmem:[#allocation10 + $0x340] ss:$8 sps:$4 sm:$0xff]  }
 0x240   :  { %1548 = vmatpush1.bf16.msra.mxu0 %v3837_v58  ;;  %v3887_v58 = vld [vmem:[#allocation10 + $0x334] ss:$8 sps:$4 sm:$0xff]  }
 0x241   :  { %1549 = vmatprep.subr.bf16.mxu0 %v3842_v59  ;;  %v3885_v59 = vld [vmem:[#allocation10 + $0x330] ss:$8 sps:$4 sm:$0xff]  }
 0x244   :  { %1550 = vmatpush1.bf16.msra.mxu0 %v3840_v60  ;;  %v3890_v60 = vld [vmem:[#allocation10 + $0x324] ss:$8 sps:$4 sm:$0xff]  }
 0x245   :  { %1551 = vmatprep.subr.bf16.mxu0 %v3845_v61  ;;  %v3888_v61 = vld [vmem:[#allocation10 + $0x320] ss:$8 sps:$4 sm:$0xff]  }
 0x248   :  { %1552 = vmatpush1.bf16.msra.mxu0 %v3843_v62  ;;  %v3893_v62 = vld [vmem:[#allocation10 + $0x314] ss:$8 sps:$4 sm:$0xff]  }
 0x249   :  { %1553 = vmatprep.subr.bf16.mxu0 %v3848_v63  ;;  %v3891_v63 = vld [vmem:[#allocation10 + $0x310] ss:$8 sps:$4 sm:$0xff]  }
 0x24c   :  { %1554 = vmatpush1.bf16.msra.mxu0 %v3846_v0  ;;  %v1117_v0 = vld [vmem:[#allocation5 + $0x8] sm:$0x3] }
 0x24d   :  { %1555 = vmatprep.subr.bf16.mxu0 %v3851_v1  ;;  %v1122_v1 = vrot.slane %v1117_v0, %v4427_v14 }
 0x250   :  { %1556 = vmatpush2.bf16.msra.mxu0 %v3849_v2  ;;  %v1126_v2 = vrot.slane %v1117_v0, %v4429_v17 }
 0x251   :  { %1557 = vmatprep.subr.bf16.mxu0 %v3854_v3 }
 0x254   :  { %1558 = vmatpush2.bf16.msra.mxu0 %v3852_v4 }
 0x255   :  { %1559 = vmatprep.subr.bf16.mxu0 %v3857_v5 }
 0x258   :  { %1560 = vmatpush2.bf16.msra.mxu0 %v3855_v6 }
 0x259   :  { %1561 = vmatprep.subr.bf16.mxu0 %v3860_v7 }
 0x25c   :  { %1562 = vmatpush2.bf16.msra.mxu0 %v3858_v8 }
 0x25d   :  { %1563 = vmatprep.subr.bf16.mxu0 %v3863_v9 }
 0x260   :  { %1564 = vmatpush2.bf16.msra.mxu0 %v3861_v10 }
 0x261   :  { %1565 = vmatprep.subr.bf16.mxu0 %v3866_v11 }
 0x264   :  { %1566 = vmatpush2.bf16.msra.mxu0 %v3864_v12 }
 0x265   :  { %1567 = vmatprep.subr.bf16.mxu0 %v3869_v46  ;;  %v3939_v46 = vld [vmem:[#allocation10 + $0x410] ss:$8 sps:$4 sm:$0xff]  }
 0x268   :  { %1568 = vmatpush2.bf16.msra.mxu0 %v3867_v47  ;;  %v3944_v47 = vld [vmem:[#allocation10 + $0x404] ss:$8 sps:$4 sm:$0xff]  }
 0x269   :  { %1569 = vmatprep.subr.bf16.mxu0 %v3872_v48  ;;  %v3942_v48 = vld [vmem:[#allocation10 + $0x400] ss:$8 sps:$4 sm:$0xff]  }
 0x26c   :  { %1570 = vmatpush2.bf16.msra.mxu0 %v3870_v49  ;;  %v3947_v49 = vld [vmem:[#allocation10 + $0x4f4] ss:$8 sps:$4 sm:$0xff]  }
 0x2ef   :  { %v1057_v18 = vpop.f32.mrf.mxu0 }
 0x2f0   :  { %v1058_v19 = vadd.f32 %v1057_v18, %v856_v15  ;;  %v3894_v15 = vld [vmem:[#allocation10 + $0x300] ss:$8 sps:$4 sm:$0xff]   ;;  %v3897_v18 = vld [vmem:[#allocation10 + $0x3f0] ss:$8 sps:$4 sm:$0xff]  }
 0x2f1   :  { %v1059_v20 = vpop.f32.mrf.mxu0 }
 0x2f2   :  { %v1064_v21 = vpack.c.bf16 %v1058_v19, %v1058_v19  ;;  %v1060_v22 = vadd.f32 %v1059_v20, %v860_v16  ;;  %v3899_v16 = vld [vmem:[#allocation10 + $0x3f4] ss:$8 sps:$4 sm:$0xff]   ;;  %v3902_v19 = vld [vmem:[#allocation10 + $0x3e4] ss:$8 sps:$4 sm:$0xff]   ;;  %v3900_v20 = vld [vmem:[#allocation10 + $0x3e0] ss:$8 sps:$4 sm:$0xff]  }
 0x2f3   :  { %v1061_v23 = vpop.f32.mrf.mxu0 }
 0x2f4   :  { %v1066_v24 = vmul.bf16 %v1064_v21, %v1064_v21  ;;  %v1065_v25 = vpack.c.bf16 %v1060_v22, %v1060_v22  ;;  %v3908_v22 = vld [vmem:[#allocation10 + $0x3c4] ss:$8 sps:$4 sm:$0xff]   ;;  %v3911_v23 = vld [vmem:[#allocation10 + $0x3b4] ss:$8 sps:$4 sm:$0xff]  }
 0x2f5   :  { %v1062_v26 = vpop.f32.mrf.mxu0 }
 0x2f6   :  { %v1068_v27 = vmul.bf16 %v1066_v24, %v1064_v21  ;;  %v1067_v28 = vmul.bf16 %v1065_v25, %v1065_v25  ;;  %v3909_v24 = vld [vmem:[#allocation10 + $0x3b0] ss:$8 sps:$4 sm:$0xff]   ;;  %v3912_v26 = vld [vmem:[#allocation10 + $0x3a0] ss:$8 sps:$4 sm:$0xff]  }
 0x2f8   :  { %v1070_v31 = vmul.bf16 1027030327, %v1068_v27  ;;  %v1069_v32 = vmul.bf16 %v1067_v28, %v1065_v25  ;;  %v3917_v27 = vld [vmem:[#allocation10 + $0x394] ss:$8 sps:$4 sm:$0xff]   ;;  %v3915_v28 = vld [vmem:[#allocation10 + $0x390] ss:$8 sps:$4 sm:$0xff]  }
 0x2fa   :  { %v1072_v33 = vadd.bf16 %v1070_v31, %v1064_v21  ;;  %v1071_v34 = vmul.bf16 1027030327, %v1069_v32  ;;  %v3920_v31 = vld [vmem:[#allocation10 + $0x384] ss:$8 sps:$4 sm:$0xff]   ;;  %v3918_v32 = vld [vmem:[#allocation10 + $0x380] ss:$8 sps:$4 sm:$0xff]  }
 0x2fc   :  { %v1074_v35 = vmul.bf16 1061961548, %v1072_v33  ;;  %v1073_v36 = vadd.bf16 %v1071_v34, %v1065_v25  ;;  %v3921_v33 = vld [vmem:[#allocation10 + $0x470] ss:$8 sps:$4 sm:$0xff]   ;;  %v3923_v34 = vld [vmem:[#allocation10 + $0x474] ss:$8 sps:$4 sm:$0xff]  }
 0x2fd   :  { %2055 = vmatprep.subr.bf16.mxu0 %v3923_v34  ;;  %v3969_v34 = vld [vmem:[#allocation10 + $0x570] ss:$8 sps:$4 sm:$0xff]  }
 0x2fe   :  { %4149 = vtanh.bf16 %v1074_v35  ;;  %v1075_v37 = vmul.bf16 1061961548, %v1073_v36  ;;  %v3926_v35 = vld [vmem:[#allocation10 + $0x464] ss:$8 sps:$4 sm:$0xff]   ;;  %v3924_v36 = vld [vmem:[#allocation10 + $0x460] ss:$8 sps:$4 sm:$0xff]  }
 0x300   :  { %4151 = vtanh.bf16 %v1075_v37  ;;  %v3929_v37 = vld [vmem:[#allocation10 + $0x454] ss:$8 sps:$4 sm:$0xff]  }
 0x30c   :  { %v4150_v38 = vpop.eup %4149 }
 0x30d   :  { %v1078_v39 = vadd.bf16 1065369472, %v4150_v38  ;;  %v3927_v38 = vld [vmem:[#allocation10 + $0x450] ss:$8 sps:$4 sm:$0xff]  }
 0x30e   :  { %v4152_v40 = vpop.eup %4151 }
 0x30f   :  { %v1079_v41 = vadd.bf16 1065369472, %v4152_v40  ;;  %v1080_v42 = vmul.bf16 1056980736, %v1078_v39  ;;  %v3932_v39 = vld [vmem:[#allocation10 + $0x444] ss:$8 sps:$4 sm:$0xff]  }
 0x310   :  { %v3930_v40 = vld [vmem:[#allocation10 + $0x440] ss:$8 sps:$4 sm:$0xff]  }
 0x311   :  { %v1081_v43 = vmul.bf16 1056980736, %v1079_v41  ;;  %v1082_v45 = vmul.bf16 %v1080_v42, %v1064_v21  ;;  %v3903_v21 = vld [vmem:[#allocation10 + $0x3d0] ss:$8 sps:$4 sm:$0xff]   ;;  %v3935_v41 = vld [vmem:[#allocation10 + $0x434] ss:$8 sps:$4 sm:$0xff]  }
 0x312   :  { %v3933_v42 = vld [vmem:[#allocation10 + $0x430] ss:$8 sps:$4 sm:$0xff]  }
 0x313   :  { %v1083_v44 = vmul.bf16 %v1081_v43, %v1065_v25  ;;  %v3914_v25 = vld [vmem:[#allocation10 + $0x3a4] ss:$8 sps:$4 sm:$0xff]  }
 0x314   :  { %v3938_v43 = vld [vmem:[#allocation10 + $0x424] ss:$8 sps:$4 sm:$0xff]  }
 0x315   :  { %1321 = vmatprep.mubr.bf16.mxu1 %v1083_v44  ;;  %v3936_v44 = vld [vmem:[#allocation10 + $0x420] ss:$8 sps:$4 sm:$0xff]  }
 0x316   :  { %1322 = vmatmul.mubr.bf16.vlgmr.msra.gmra.mxu1 %v1082_v45  ;;  %v3941_v45 = vld [vmem:[#allocation10 + $0x414] ss:$8 sps:$4 sm:$0xff]  }
 0x317   :  { %1806 = vmatpush1.bf16.msra.mxu1 %v3873_v50  ;;  %v3945_v50 = vld [vmem:[#allocation10 + $0x4f0] ss:$8 sps:$4 sm:$0xff]  }
 0x318   :  { %1807 = vmatprep.subr.bf16.mxu1 %v3878_v52  ;;  %v3948_v52 = vld [vmem:[#allocation10 + $0x4e0] ss:$8 sps:$4 sm:$0xff]  }
 0x31b   :  { %1808 = vmatpush1.bf16.msra.mxu1 %v3876_v53  ;;  %v3953_v53 = vld [vmem:[#allocation10 + $0x4d4] ss:$8 sps:$4 sm:$0xff]  }
 0x31c   :  { %1809 = vmatprep.subr.bf16.mxu1 %v3881_v54  ;;  %v3951_v54 = vld [vmem:[#allocation10 + $0x4d0] ss:$8 sps:$4 sm:$0xff]  }
 0x31f   :  { %1810 = vmatpush1.bf16.msra.mxu1 %v3879_v55  ;;  %v3956_v55 = vld [vmem:[#allocation10 + $0x4c4] ss:$8 sps:$4 sm:$0xff]  }
 0x320   :  { %1811 = vmatprep.subr.bf16.mxu1 %v3884_v56  ;;  %v3954_v56 = vld [vmem:[#allocation10 + $0x4c0] ss:$8 sps:$4 sm:$0xff]  }
 0x323   :  { %1812 = vmatpush1.bf16.msra.mxu1 %v3882_v57  ;;  %v3959_v57 = vld [vmem:[#allocation10 + $0x4b4] ss:$8 sps:$4 sm:$0xff]  }
 0x324   :  { %1813 = vmatprep.subr.bf16.mxu1 %v3887_v58  ;;  %v3957_v58 = vld [vmem:[#allocation10 + $0x4b0] ss:$8 sps:$4 sm:$0xff]  }
 0x327   :  { %1814 = vmatpush1.bf16.msra.mxu1 %v3885_v59  ;;  %v3962_v59 = vld [vmem:[#allocation10 + $0x4a4] ss:$8 sps:$4 sm:$0xff]  }
 0x328   :  { %1815 = vmatprep.subr.bf16.mxu1 %v3890_v60  ;;  %v3960_v60 = vld [vmem:[#allocation10 + $0x4a0] ss:$8 sps:$4 sm:$0xff]  }
 0x32b   :  { %1816 = vmatpush1.bf16.msra.mxu1 %v3888_v61  ;;  %v1367_v61 = vld [vmem:[#allocation5 + $0xa] sm:$0x3] }
 0x32c   :  { %1817 = vmatprep.subr.bf16.mxu1 %v3893_v62  ;;  %v1372_v62 = vrot.slane %v1367_v61, %v4427_v14 }
 0x32f   :  { %1818 = vmatpush1.bf16.msra.mxu1 %v3891_v63  ;;  %v1376_v63 = vrot.slane %v1367_v61, %v4429_v17  ;;  %v3992_v61 = vld [vmem:[#allocation10 + $0x504] ss:$8 sps:$4 sm:$0xff]  }
 0x330   :  { %1819 = vmatprep.subr.bf16.mxu1 %v3896_v13 }
 0x333   :  { %1820 = vmatpush1.bf16.msra.mxu1 %v3894_v15 }
 0x334   :  { %1821 = vmatprep.subr.bf16.mxu1 %v3899_v16 }
 0x337   :  { %1822 = vmatpush2.bf16.msra.mxu1 %v3897_v18 }
 0x338   :  { %1823 = vmatprep.subr.bf16.mxu1 %v3902_v19 }
 0x33b   :  { %1824 = vmatpush2.bf16.msra.mxu1 %v3900_v20 }
 0x3d6   :  { %v1323_v3 = vpop.f32.mrf.mxu1 }
 0x3d7   :  { %v1324_v4 = vadd.f32 %v1323_v3, %v1122_v1 }
 0x3d8   :  { %v1325_v5 = vpop.f32.mrf.mxu1 }
 0x3d9   :  { %v1326_v6 = vadd.f32 %v1325_v5, %v1126_v2  ;;  %v1330_v7 = vpack.c.bf16 %v1324_v4, %v1324_v4 }
 0x3da   :  { %v1327_v8 = vpop.f32.mrf.mxu1 }
 0x3db   :  { %v1331_v9 = vpack.c.bf16 %v1326_v6, %v1326_v6  ;;  %v4449_v12 = vadd.bf16 %v1330_v7, %v4437_v30  ;;  %v3906_v30 = vld [vmem:[#allocation10 + $0x3c0] ss:$8 sps:$4 sm:$0xff]  }
 0x3dc   :  { %v1328_v10 = vpop.f32.mrf.mxu1 }
 0x3dd   :  { %v4446_v11 = vadd.bf16 %v1331_v9, %v4435_v29  ;;  %v3905_v29 = vld [vmem:[#allocation10 + $0x3d4] ss:$8 sps:$4 sm:$0xff]  }
 0x3de   :  { %1825 = vmatprep.subr.bf16.mxu1 %v3905_v29 }
 0x3df   :  { %1571 = vmatprep.mubr.bf16.mxu0 %v4446_v11  ;;  %1826 = vmatpush2.bf16.msra.mxu1 %v3903_v21 }
 0x3e0   :  { %1572 = vmatmul.mubr.bf16.vlgmr.msra.gmra.mxu0 %v4449_v12  ;;  %1827 = vmatprep.subr.bf16.mxu1 %v3908_v22 }
 0x3e1   :  { %2056 = vmatpush1.bf16.msra.mxu0 %v3921_v33  ;;  %v3966_v33 = vld [vmem:[#allocation10 + $0x480] ss:$8 sps:$4 sm:$0xff]  }
 0x3e2   :  { %2057 = vmatprep.subr.bf16.mxu0 %v3926_v35  ;;  %v3971_v35 = vld [vmem:[#allocation10 + $0x574] ss:$8 sps:$4 sm:$0xff]  }
 0x3e3   :  { %1828 = vmatpush2.bf16.msra.mxu1 %v3906_v30 }
 0x3e4   :  { %1829 = vmatprep.subr.bf16.mxu1 %v3911_v23 }
 0x3e5   :  { %2058 = vmatpush1.bf16.msra.mxu0 %v3924_v36  ;;  %v3974_v36 = vld [vmem:[#allocation10 + $0x564] ss:$8 sps:$4 sm:$0xff]  }
 0x3e6   :  { %2059 = vmatprep.subr.bf16.mxu0 %v3929_v37  ;;  %v3972_v37 = vld [vmem:[#allocation10 + $0x560] ss:$8 sps:$4 sm:$0xff]  }
 0x3e7   :  { %1830 = vmatpush2.bf16.msra.mxu1 %v3909_v24 }
 0x3e8   :  { %1831 = vmatprep.subr.bf16.mxu1 %v3914_v25 }
 0x3e9   :  { %2060 = vmatpush1.bf16.msra.mxu0 %v3927_v38  ;;  %v3977_v38 = vld [vmem:[#allocation10 + $0x554] ss:$8 sps:$4 sm:$0xff]  }
 0x3ea   :  { %2061 = vmatprep.subr.bf16.mxu0 %v3932_v39  ;;  %v3975_v39 = vld [vmem:[#allocation10 + $0x550] ss:$8 sps:$4 sm:$0xff]  }
 0x3eb   :  { %1832 = vmatpush2.bf16.msra.mxu1 %v3912_v26 }
 0x3ec   :  { %1833 = vmatprep.subr.bf16.mxu1 %v3917_v27 }
 0x3ed   :  { %2062 = vmatpush1.bf16.msra.mxu0 %v3930_v40  ;;  %v3980_v40 = vld [vmem:[#allocation10 + $0x544] ss:$8 sps:$4 sm:$0xff]  }
 0x3ee   :  { %2063 = vmatprep.subr.bf16.mxu0 %v3935_v41  ;;  %v3978_v41 = vld [vmem:[#allocation10 + $0x540] ss:$8 sps:$4 sm:$0xff]  }
 0x3ef   :  { %1834 = vmatpush2.bf16.msra.mxu1 %v3915_v28  ;;  %v3965_v28 = vld [vmem:[#allocation10 + $0x494] ss:$8 sps:$4 sm:$0xff]  }
 0x3f0   :  { %1835 = vmatprep.subr.bf16.mxu1 %v3920_v31  ;;  %v3963_v31 = vld [vmem:[#allocation10 + $0x490] ss:$8 sps:$4 sm:$0xff]  }
 0x3f1   :  { %2064 = vmatpush1.bf16.msra.mxu0 %v3933_v42  ;;  %v3983_v42 = vld [vmem:[#allocation10 + $0x534] ss:$8 sps:$4 sm:$0xff]  }
 0x3f2   :  { %2065 = vmatprep.subr.bf16.mxu0 %v3938_v43  ;;  %v3981_v43 = vld [vmem:[#allocation10 + $0x530] ss:$8 sps:$4 sm:$0xff]  }
 0x3f3   :  { %1836 = vmatpush2.bf16.msra.mxu1 %v3918_v32  ;;  %v3968_v32 = vld [vmem:[#allocation10 + $0x484] ss:$8 sps:$4 sm:$0xff]  }
 0x3f4   :  { %2321 = vmatprep.subr.bf16.mxu1 %v3971_v35  ;;  %v4046_v35 = vld [vmem:[#allocation10 + $0x6e4] ss:$8 sps:$4 sm:$0xff]  }
 0x3f5   :  { %2066 = vmatpush1.bf16.msra.mxu0 %v3936_v44  ;;  %v3986_v44 = vld [vmem:[#allocation10 + $0x524] ss:$8 sps:$4 sm:$0xff]  }
 0x3f6   :  { %2067 = vmatprep.subr.bf16.mxu0 %v3941_v45  ;;  %v3984_v45 = vld [vmem:[#allocation10 + $0x520] ss:$8 sps:$4 sm:$0xff]  }
 0x3f9   :  { %2068 = vmatpush1.bf16.msra.mxu0 %v3939_v46  ;;  %v3989_v46 = vld [vmem:[#allocation10 + $0x514] ss:$8 sps:$4 sm:$0xff]  }
 0x3fa   :  { %2069 = vmatprep.subr.bf16.mxu0 %v3944_v47  ;;  %v3987_v47 = vld [vmem:[#allocation10 + $0x510] ss:$8 sps:$4 sm:$0xff]  }
 0x3fd   :  { %2070 = vmatpush1.bf16.msra.mxu0 %v3942_v48  ;;  %v1633_v48 = vld [vmem:[#allocation5 + $0xc] sm:$0x3] }
 0x3fe   :  { %2071 = vmatprep.subr.bf16.mxu0 %v3947_v49  ;;  %v1638_v49 = vrot.slane %v1633_v48, %v4427_v14 }
 0x401   :  { %2072 = vmatpush2.bf16.msra.mxu0 %v3945_v50  ;;  %v1642_v50 = vrot.slane %v1633_v48, %v4429_v17 }
 0x402   :  { %2073 = vmatprep.subr.bf16.mxu0 %v3950_v51 }
 0x405   :  { %2074 = vmatpush2.bf16.msra.mxu0 %v3948_v52 }
 0x406   :  { %2075 = vmatprep.subr.bf16.mxu0 %v3953_v53 }
 0x409   :  { %2076 = vmatpush2.bf16.msra.mxu0 %v3951_v54 }
 0x40a   :  { %2077 = vmatprep.subr.bf16.mxu0 %v3956_v55 }
 0x40d   :  { %2078 = vmatpush2.bf16.msra.mxu0 %v3954_v56 }
 0x40e   :  { %2079 = vmatprep.subr.bf16.mxu0 %v3959_v57 }
 0x411   :  { %2080 = vmatpush2.bf16.msra.mxu0 %v3957_v58 }
 0x412   :  { %2081 = vmatprep.subr.bf16.mxu0 %v3962_v59 }
 0x415   :  { %2082 = vmatpush2.bf16.msra.mxu0 %v3960_v60 }
 0x416   :  { %2083 = vmatprep.subr.bf16.mxu0 %v3965_v28  ;;  %v4035_v28 = vld [vmem:[#allocation10 + $0x610] ss:$8 sps:$4 sm:$0xff]  }
 0x419   :  { %2084 = vmatpush2.bf16.msra.mxu0 %v3963_v31  ;;  %v4040_v31 = vld [vmem:[#allocation10 + $0x604] ss:$8 sps:$4 sm:$0xff]  }
 0x41a   :  { %2085 = vmatprep.subr.bf16.mxu0 %v3968_v32  ;;  %v4038_v32 = vld [vmem:[#allocation10 + $0x600] ss:$8 sps:$4 sm:$0xff]  }
 0x41d   :  { %2086 = vmatpush2.bf16.msra.mxu0 %v3966_v33  ;;  %v4043_v33 = vld [vmem:[#allocation10 + $0x6f4] ss:$8 sps:$4 sm:$0xff]  }
 0x4a0   :  { %v1573_v0 = vpop.f32.mrf.mxu0 }
 0x4a1   :  { %v1574_v1 = vadd.f32 %v1573_v0, %v1372_v62  ;;  %v3990_v62 = vld [vmem:[#allocation10 + $0x500] ss:$8 sps:$4 sm:$0xff]   ;;  %v3993_v0 = vld [vmem:[#allocation10 + $0x5f0] ss:$8 sps:$4 sm:$0xff]  }
 0x4a2   :  { %v1575_v2 = vpop.f32.mrf.mxu0 }
 0x4a3   :  { %v1580_v3 = vpack.c.bf16 %v1574_v1, %v1574_v1  ;;  %v1576_v4 = vadd.f32 %v1575_v2, %v1376_v63  ;;  %v3995_v63 = vld [vmem:[#allocation10 + $0x5f4] ss:$8 sps:$4 sm:$0xff]   ;;  %v3998_v1 = vld [vmem:[#allocation10 + $0x5e4] ss:$8 sps:$4 sm:$0xff]   ;;  %v3996_v2 = vld [vmem:[#allocation10 + $0x5e0] ss:$8 sps:$4 sm:$0xff]  }
 0x4a4   :  { %v1577_v5 = vpop.f32.mrf.mxu0 }
 0x4a5   :  { %v1582_v6 = vmul.bf16 %v1580_v3, %v1580_v3  ;;  %v1581_v7 = vpack.c.bf16 %v1576_v4, %v1576_v4  ;;  %v4004_v4 = vld [vmem:[#allocation10 + $0x5c4] ss:$8 sps:$4 sm:$0xff]   ;;  %v4007_v5 = vld [vmem:[#allocation10 + $0x5b4] ss:$8 sps:$4 sm:$0xff]  }
 0x4a6   :  { %v1578_v8 = vpop.f32.mrf.mxu0 }
 0x4a7   :  { %v1584_v9 = vmul.bf16 %v1582_v6, %v1580_v3  ;;  %v1583_v10 = vmul.bf16 %v1581_v7, %v1581_v7  ;;  %v4005_v6 = vld [vmem:[#allocation10 + $0x5b0] ss:$8 sps:$4 sm:$0xff]   ;;  %v4008_v8 = vld [vmem:[#allocation10 + $0x5a0] ss:$8 sps:$4 sm:$0xff]  }
 0x4a9   :  { %v1586_v13 = vmul.bf16 1027030327, %v1584_v9  ;;  %v1585_v15 = vmul.bf16 %v1583_v10, %v1581_v7  ;;  %v4013_v9 = vld [vmem:[#allocation10 + $0x594] ss:$8 sps:$4 sm:$0xff]   ;;  %v4011_v10 = vld [vmem:[#allocation10 + $0x590] ss:$8 sps:$4 sm:$0xff]  }
 0x4ab   :  { %v1588_v16 = vadd.bf16 %v1586_v13, %v1580_v3  ;;  %v1587_v18 = vmul.bf16 1027030327, %v1585_v15  ;;  %v4016_v13 = vld [vmem:[#allocation10 + $0x584] ss:$8 sps:$4 sm:$0xff]   ;;  %v4014_v15 = vld [vmem:[#allocation10 + $0x580] ss:$8 sps:$4 sm:$0xff]  }
 0x4ad   :  { %v1590_v19 = vmul.bf16 1061961548, %v1588_v16  ;;  %v1589_v20 = vadd.bf16 %v1587_v18, %v1581_v7  ;;  %v4017_v16 = vld [vmem:[#allocation10 + $0x670] ss:$8 sps:$4 sm:$0xff]   ;;  %v4019_v18 = vld [vmem:[#allocation10 + $0x674] ss:$8 sps:$4 sm:$0xff]  }
 0x4ae   :  { %2571 = vmatprep.subr.bf16.mxu0 %v4019_v18  ;;  %v4065_v18 = vld [vmem:[#allocation10 + $0x770] ss:$8 sps:$4 sm:$0xff]  }
 0x4af   :  { %4153 = vtanh.bf16 %v1590_v19  ;;  %v1591_v29 = vmul.bf16 1061961548, %v1589_v20  ;;  %v4022_v19 = vld [vmem:[#allocation10 + $0x664] ss:$8 sps:$4 sm:$0xff]   ;;  %v4020_v20 = vld [vmem:[#allocation10 + $0x660] ss:$8 sps:$4 sm:$0xff]  }
 0x4b1   :  { %4155 = vtanh.bf16 %v1591_v29  ;;  %v4025_v29 = vld [vmem:[#allocation10 + $0x654] ss:$8 sps:$4 sm:$0xff]  }
 0x4bd   :  { %v4154_v21 = vpop.eup %4153 }
 0x4be   :  { %v1594_v30 = vadd.bf16 1065369472, %v4154_v21  ;;  %v4023_v21 = vld [vmem:[#allocation10 + $0x650] ss:$8 sps:$4 sm:$0xff]  }
 0x4bf   :  { %v4156_v22 = vpop.eup %4155 }
 0x4c0   :  { %v1595_v23 = vadd.bf16 1065369472, %v4156_v22  ;;  %v1596_v24 = vmul.bf16 1056980736, %v1594_v30  ;;  %v4028_v30 = vld [vmem:[#allocation10 + $0x644] ss:$8 sps:$4 sm:$0xff]  }
 0x4c1   :  { %v4026_v22 = vld [vmem:[#allocation10 + $0x640] ss:$8 sps:$4 sm:$0xff]  }
 0x4c2   :  { %v1597_v25 = vmul.bf16 1056980736, %v1595_v23  ;;  %v1598_v27 = vmul.bf16 %v1596_v24, %v1580_v3  ;;  %v3999_v3 = vld [vmem:[#allocation10 + $0x5d0] ss:$8 sps:$4 sm:$0xff]   ;;  %v4031_v23 = vld [vmem:[#allocation10 + $0x634] ss:$8 sps:$4 sm:$0xff]  }
 0x4c3   :  { %v4029_v24 = vld [vmem:[#allocation10 + $0x630] ss:$8 sps:$4 sm:$0xff]  }
 0x4c4   :  { %v1599_v26 = vmul.bf16 %v1597_v25, %v1581_v7  ;;  %v4010_v7 = vld [vmem:[#allocation10 + $0x5a4] ss:$8 sps:$4 sm:$0xff]  }
 0x4c5   :  { %v4034_v25 = vld [vmem:[#allocation10 + $0x624] ss:$8 sps:$4 sm:$0xff]  }
 0x4c6   :  { %1837 = vmatprep.mubr.bf16.mxu1 %v1599_v26  ;;  %v4032_v26 = vld [vmem:[#allocation10 + $0x620] ss:$8 sps:$4 sm:$0xff]  }
 0x4c7   :  { %1838 = vmatmul.mubr.bf16.vlgmr.msra.gmra.mxu1 %v1598_v27  ;;  %v4037_v27 = vld [vmem:[#allocation10 + $0x614] ss:$8 sps:$4 sm:$0xff]  }
 0x4c8   :  { %2322 = vmatpush1.bf16.msra.mxu1 %v3969_v34  ;;  %v4041_v34 = vld [vmem:[#allocation10 + $0x6f0] ss:$8 sps:$4 sm:$0xff]  }
 0x4c9   :  { %2323 = vmatprep.subr.bf16.mxu1 %v3974_v36  ;;  %v4044_v36 = vld [vmem:[#allocation10 + $0x6e0] ss:$8 sps:$4 sm:$0xff]  }
 0x4cc   :  { %2324 = vmatpush1.bf16.msra.mxu1 %v3972_v37  ;;  %v4049_v37 = vld [vmem:[#allocation10 + $0x6d4] ss:$8 sps:$4 sm:$0xff]  }
 0x4cd   :  { %2325 = vmatprep.subr.bf16.mxu1 %v3977_v38  ;;  %v4047_v38 = vld [vmem:[#allocation10 + $0x6d0] ss:$8 sps:$4 sm:$0xff]  }
 0x4d0   :  { %2326 = vmatpush1.bf16.msra.mxu1 %v3975_v39  ;;  %v4052_v39 = vld [vmem:[#allocation10 + $0x6c4] ss:$8 sps:$4 sm:$0xff]  }
 0x4d1   :  { %2327 = vmatprep.subr.bf16.mxu1 %v3980_v40  ;;  %v4050_v40 = vld [vmem:[#allocation10 + $0x6c0] ss:$8 sps:$4 sm:$0xff]  }
 0x4d4   :  { %2328 = vmatpush1.bf16.msra.mxu1 %v3978_v41  ;;  %v4055_v41 = vld [vmem:[#allocation10 + $0x6b4] ss:$8 sps:$4 sm:$0xff]  }
 0x4d5   :  { %2329 = vmatprep.subr.bf16.mxu1 %v3983_v42  ;;  %v4053_v42 = vld [vmem:[#allocation10 + $0x6b0] ss:$8 sps:$4 sm:$0xff]  }
 0x4d8   :  { %2330 = vmatpush1.bf16.msra.mxu1 %v3981_v43  ;;  %v4058_v43 = vld [vmem:[#allocation10 + $0x6a4] ss:$8 sps:$4 sm:$0xff]  }
 0x4d9   :  { %2331 = vmatprep.subr.bf16.mxu1 %v3986_v44  ;;  %v4056_v44 = vld [vmem:[#allocation10 + $0x6a0] ss:$8 sps:$4 sm:$0xff]  }
 0x4dc   :  { %2332 = vmatpush1.bf16.msra.mxu1 %v3984_v45  ;;  %v1883_v45 = vld [vmem:[#allocation5 + $0xe] sm:$0x3] }
 0x4dd   :  { %2333 = vmatprep.subr.bf16.mxu1 %v3989_v46  ;;  %v1888_v46 = vrot.slane %v1883_v45, %v4427_v14 }
 0x4e0   :  { %2334 = vmatpush1.bf16.msra.mxu1 %v3987_v47  ;;  %v1892_v47 = vrot.slane %v1883_v45, %v4429_v17  ;;  %v4088_v45 = vld [vmem:[#allocation10 + $0x704] ss:$8 sps:$4 sm:$0xff]  }
 0x4e1   :  { %2335 = vmatprep.subr.bf16.mxu1 %v3992_v61 }
 0x4e4   :  { %2336 = vmatpush1.bf16.msra.mxu1 %v3990_v62 }
 0x4e5   :  { %2337 = vmatprep.subr.bf16.mxu1 %v3995_v63 }
 0x4e8   :  { %2338 = vmatpush2.bf16.msra.mxu1 %v3993_v0 }
 0x4e9   :  { %2339 = vmatprep.subr.bf16.mxu1 %v3998_v1 }
 0x4ec   :  { %2340 = vmatpush2.bf16.msra.mxu1 %v3996_v2 }
 0x587   :  { %v1839_v51 = vpop.f32.mrf.mxu1 }
 0x588   :  { %v1840_v52 = vadd.f32 %v1839_v51, %v1638_v49 }
 0x589   :  { %v1841_v53 = vpop.f32.mrf.mxu1 }
 0x58a   :  { %v1842_v54 = vadd.f32 %v1841_v53, %v1642_v50  ;;  %v1846_v55 = vpack.c.bf16 %v1840_v52, %v1840_v52 }
 0x58b   :  { %v1843_v56 = vpop.f32.mrf.mxu1 }
 0x58c   :  { %v1847_v57 = vpack.c.bf16 %v1842_v54, %v1842_v54  ;;  %v4461_v60 = vadd.bf16 %v1846_v55, %v4449_v12  ;;  %v4002_v12 = vld [vmem:[#allocation10 + $0x5c0] ss:$8 sps:$4 sm:$0xff]  }
 0x58d   :  { %v1844_v58 = vpop.f32.mrf.mxu1 }
 0x58e   :  { %v4458_v59 = vadd.bf16 %v1847_v57, %v4446_v11  ;;  %v4001_v11 = vld [vmem:[#allocation10 + $0x5d4] ss:$8 sps:$4 sm:$0xff]  }
 0x58f   :  { %2341 = vmatprep.subr.bf16.mxu1 %v4001_v11 }
 0x590   :  { %2087 = vmatprep.mubr.bf16.mxu0 %v4458_v59  ;;  %2342 = vmatpush2.bf16.msra.mxu1 %v3999_v3 }
 0x591   :  { %2088 = vmatmul.mubr.bf16.vlgmr.msra.gmra.mxu0 %v4461_v60  ;;  %2343 = vmatprep.subr.bf16.mxu1 %v4004_v4 }
 0x592   :  { %2572 = vmatpush1.bf16.msra.mxu0 %v4017_v16  ;;  %v4062_v16 = vld [vmem:[#allocation10 + $0x680] ss:$8 sps:$4 sm:$0xff]  }
 0x593   :  { %2573 = vmatprep.subr.bf16.mxu0 %v4022_v19  ;;  %v4067_v19 = vld [vmem:[#allocation10 + $0x774] ss:$8 sps:$4 sm:$0xff]  }
 0x594   :  { %2344 = vmatpush2.bf16.msra.mxu1 %v4002_v12 }
 0x595   :  { %2345 = vmatprep.subr.bf16.mxu1 %v4007_v5 }
 0x596   :  { %2574 = vmatpush1.bf16.msra.mxu0 %v4020_v20  ;;  %v4070_v20 = vld [vmem:[#allocation10 + $0x764] ss:$8 sps:$4 sm:$0xff]  }
 0x597   :  { %2575 = vmatprep.subr.bf16.mxu0 %v4025_v29  ;;  %v4068_v29 = vld [vmem:[#allocation10 + $0x760] ss:$8 sps:$4 sm:$0xff]  }
 0x598   :  { %2346 = vmatpush2.bf16.msra.mxu1 %v4005_v6 }
 0x599   :  { %2347 = vmatprep.subr.bf16.mxu1 %v4010_v7 }
 0x59a   :  { %2576 = vmatpush1.bf16.msra.mxu0 %v4023_v21  ;;  %v4073_v21 = vld [vmem:[#allocation10 + $0x754] ss:$8 sps:$4 sm:$0xff]  }
 0x59b   :  { %2577 = vmatprep.subr.bf16.mxu0 %v4028_v30  ;;  %v4071_v30 = vld [vmem:[#allocation10 + $0x750] ss:$8 sps:$4 sm:$0xff]  }
 0x59c   :  { %2348 = vmatpush2.bf16.msra.mxu1 %v4008_v8 }
 0x59d   :  { %2349 = vmatprep.subr.bf16.mxu1 %v4013_v9 }
 0x59e   :  { %2578 = vmatpush1.bf16.msra.mxu0 %v4026_v22  ;;  %v4076_v22 = vld [vmem:[#allocation10 + $0x744] ss:$8 sps:$4 sm:$0xff]  }
 0x59f   :  { %2579 = vmatprep.subr.bf16.mxu0 %v4031_v23  ;;  %v4074_v23 = vld [vmem:[#allocation10 + $0x740] ss:$8 sps:$4 sm:$0xff]  }
 0x5a0   :  { %2350 = vmatpush2.bf16.msra.mxu1 %v4011_v10  ;;  %v4061_v10 = vld [vmem:[#allocation10 + $0x694] ss:$8 sps:$4 sm:$0xff]  }
 0x5a1   :  { %2351 = vmatprep.subr.bf16.mxu1 %v4016_v13  ;;  %v4059_v13 = vld [vmem:[#allocation10 + $0x690] ss:$8 sps:$4 sm:$0xff]  }
 0x5a2   :  { %2580 = vmatpush1.bf16.msra.mxu0 %v4029_v24  ;;  %v4079_v24 = vld [vmem:[#allocation10 + $0x734] ss:$8 sps:$4 sm:$0xff]  }
 0x5a3   :  { %2581 = vmatprep.subr.bf16.mxu0 %v4034_v25  ;;  %v4077_v25 = vld [vmem:[#allocation10 + $0x730] ss:$8 sps:$4 sm:$0xff]  }
 0x5a4   :  { %2352 = vmatpush2.bf16.msra.mxu1 %v4014_v15  ;;  %v4064_v15 = vld [vmem:[#allocation10 + $0x684] ss:$8 sps:$4 sm:$0xff]  }
 0x5a5   :  { %2837 = vmatprep.subr.bf16.mxu1 %v4067_v19 }
 0x5a6   :  { %2582 = vmatpush1.bf16.msra.mxu0 %v4032_v26  ;;  %v4082_v26 = vld [vmem:[#allocation10 + $0x724] ss:$8 sps:$4 sm:$0xff]  }
 0x5a7   :  { %2583 = vmatprep.subr.bf16.mxu0 %v4037_v27  ;;  %v4080_v27 = vld [vmem:[#allocation10 + $0x720] ss:$8 sps:$4 sm:$0xff]  }
 0x5aa   :  { %2584 = vmatpush1.bf16.msra.mxu0 %v4035_v28  ;;  %v4085_v28 = vld [vmem:[#allocation10 + $0x714] ss:$8 sps:$4 sm:$0xff]  }
 0x5ab   :  { %2585 = vmatprep.subr.bf16.mxu0 %v4040_v31  ;;  %v4083_v31 = vld [vmem:[#allocation10 + $0x710] ss:$8 sps:$4 sm:$0xff]  }
 0x5ae   :  { %2586 = vmatpush1.bf16.msra.mxu0 %v4038_v32  ;;  %v2149_v32 = vld [vmem:[#allocation5 + $0x10] sm:$0x3] }
 0x5af   :  { %2587 = vmatprep.subr.bf16.mxu0 %v4043_v33  ;;  %v2154_v33 = vrot.slane %v2149_v32, %v4427_v14 }
 0x5b2   :  { %2588 = vmatpush2.bf16.msra.mxu0 %v4041_v34  ;;  %v2158_v34 = vrot.slane %v2149_v32, %v4429_v17 }
 0x5b3   :  { %2589 = vmatprep.subr.bf16.mxu0 %v4046_v35 }
 0x5b6   :  { %2590 = vmatpush2.bf16.msra.mxu0 %v4044_v36 }
 0x5b7   :  { %2591 = vmatprep.subr.bf16.mxu0 %v4049_v37 }
 0x5ba   :  { %2592 = vmatpush2.bf16.msra.mxu0 %v4047_v38 }
 0x5bb   :  { %2593 = vmatprep.subr.bf16.mxu0 %v4052_v39 }
 0x5be   :  { %2594 = vmatpush2.bf16.msra.mxu0 %v4050_v40 }
 0x5bf   :  { %2595 = vmatprep.subr.bf16.mxu0 %v4055_v41 }
 0x5c2   :  { %2596 = vmatpush2.bf16.msra.mxu0 %v4053_v42 }
 0x5c3   :  { %2597 = vmatprep.subr.bf16.mxu0 %v4058_v43 }
 0x5c6   :  { %2598 = vmatpush2.bf16.msra.mxu0 %v4056_v44 }
 0x5c7   :  { %2599 = vmatprep.subr.bf16.mxu0 %v4061_v10 }
 0x5ca   :  { %2600 = vmatpush2.bf16.msra.mxu0 %v4059_v13 }
 0x5cb   :  { %2601 = vmatprep.subr.bf16.mxu0 %v4064_v15 }
 0x5ce   :  { %2602 = vmatpush2.bf16.msra.mxu0 %v4062_v16 }
 0x651   :  { %v2089_v48 = vpop.f32.mrf.mxu0 }
 0x652   :  { %v2090_v49 = vadd.f32 %v2089_v48, %v1888_v46  ;;  %v4086_v46 = vld [vmem:[#allocation10 + $0x700] ss:$8 sps:$4 sm:$0xff]   ;;  %v4089_v48 = vld [vmem:[#allocation10 + $0x7f0] ss:$8 sps:$4 sm:$0xff]  }
 0x653   :  { %v2091_v50 = vpop.f32.mrf.mxu0 }
 0x654   :  { %v2096_v51 = vpack.c.bf16 %v2090_v49, %v2090_v49  ;;  %v2092_v52 = vadd.f32 %v2091_v50, %v1892_v47  ;;  %v4091_v47 = vld [vmem:[#allocation10 + $0x7f4] ss:$8 sps:$4 sm:$0xff]   ;;  %v4094_v49 = vld [vmem:[#allocation10 + $0x7e4] ss:$8 sps:$4 sm:$0xff]   ;;  %v4092_v50 = vld [vmem:[#allocation10 + $0x7e0] ss:$8 sps:$4 sm:$0xff]  }
 0x655   :  { %v2093_v53 = vpop.f32.mrf.mxu0 }
 0x656   :  { %v2098_v54 = vmul.bf16 %v2096_v51, %v2096_v51  ;;  %v2097_v55 = vpack.c.bf16 %v2092_v52, %v2092_v52  ;;  %v4100_v52 = vld [vmem:[#allocation10 + $0x7c4] ss:$8 sps:$4 sm:$0xff]   ;;  %v4103_v53 = vld [vmem:[#allocation10 + $0x7b4] ss:$8 sps:$4 sm:$0xff]  }
 0x657   :  { %v2094_v56 = vpop.f32.mrf.mxu0 }
 0x658   :  { %v2100_v57 = vmul.bf16 %v2098_v54, %v2096_v51  ;;  %v2099_v58 = vmul.bf16 %v2097_v55, %v2097_v55  ;;  %v4101_v54 = vld [vmem:[#allocation10 + $0x7b0] ss:$8 sps:$4 sm:$0xff]   ;;  %v4104_v56 = vld [vmem:[#allocation10 + $0x7a0] ss:$8 sps:$4 sm:$0xff]  }
 0x65a   :  { %v2102_v61 = vmul.bf16 1027030327, %v2100_v57  ;;  %v2101_v62 = vmul.bf16 %v2099_v58, %v2097_v55  ;;  %v4109_v57 = vld [vmem:[#allocation10 + $0x794] ss:$8 sps:$4 sm:$0xff]   ;;  %v4107_v58 = vld [vmem:[#allocation10 + $0x790] ss:$8 sps:$4 sm:$0xff]  }
 0x65c   :  { %v2104_v63 = vadd.bf16 %v2102_v61, %v2096_v51  ;;  %v2103_v0 = vmul.bf16 1027030327, %v2101_v62  ;;  %v4112_v61 = vld [vmem:[#allocation10 + $0x784] ss:$8 sps:$4 sm:$0xff]   ;;  %v4110_v62 = vld [vmem:[#allocation10 + $0x780] ss:$8 sps:$4 sm:$0xff]  }
 0x65e   :  { %v2106_v1 = vmul.bf16 1061961548, %v2104_v63  ;;  %v2105_v2 = vadd.bf16 %v2103_v0, %v2097_v55  ;;  %v4113_v63 = vld [vmem:[#allocation11 + $0x78] sm:$0xff]  }
 0x65f   :  { %v4114_v0 = vld [vmem:[#allocation11 + $0x38] sm:$0xff]   ;;  %3553 = vmatprep.subr.bf16.mxu0 %v4113_v63  ;;  %v4132_v63 = vld [vmem:[#allocation13 + $0x20] sm:$0xff]  }
 0x660   :  { %4157 = vtanh.bf16 %v2106_v1  ;;  %v2107_v11 = vmul.bf16 1061961548, %v2105_v2  ;;  %v4115_v1 = vld [vmem:[#allocation11 + $0x70] sm:$0xff]  }
 0x661   :  { %v4116_v2 = vld [vmem:[#allocation11 + $0x30] sm:$0xff]  }
 0x662   :  { %4159 = vtanh.bf16 %v2107_v11  ;;  %v4117_v11 = vld [vmem:[#allocation11 + $0x68] sm:$0xff]  }
 0x66e   :  { %v4158_v3 = vpop.eup %4157 }
 0x66f   :  { %v2110_v12 = vadd.bf16 1065369472, %v4158_v3  ;;  %v4118_v3 = vld [vmem:[#allocation11 + $0x28] sm:$0xff]  }
 0x670   :  { %v4160_v4 = vpop.eup %4159 }
 0x671   :  { %v2111_v5 = vadd.bf16 1065369472, %v4160_v4  ;;  %v2112_v6 = vmul.bf16 1056980736, %v2110_v12  ;;  %v4119_v12 = vld [vmem:[#allocation11 + $0x60] sm:$0xff]  }
 0x672   :  { %v4120_v4 = vld [vmem:[#allocation11 + $0x20] sm:$0xff]  }
 0x673   :  { %v2113_v7 = vmul.bf16 1056980736, %v2111_v5  ;;  %v2114_v9 = vmul.bf16 %v2112_v6, %v2096_v51  ;;  %v4095_v51 = vld [vmem:[#allocation10 + $0x7d0] ss:$8 sps:$4 sm:$0xff]  }
 0x674   :  { %v4121_v5 = vld [vmem:[#allocation11 + $0x58] sm:$0xff]  }
 0x675   :  { %v2115_v8 = vmul.bf16 %v2113_v7, %v2097_v55  ;;  %v4106_v55 = vld [vmem:[#allocation10 + $0x7a4] ss:$8 sps:$4 sm:$0xff]   ;;  %v4122_v6 = vld [vmem:[#allocation11 + $0x18] sm:$0xff]   ;;  %v4123_v7 = vld [vmem:[#allocation11 + $0x50] sm:$0xff]  }
 0x677   :  { %2353 = vmatprep.mubr.bf16.mxu1 %v2115_v8  ;;  %v4124_v8 = vld [vmem:[#allocation11 + $0x10] sm:$0xff]  }
 0x678   :  { %2354 = vmatmul.mubr.bf16.vlgmr.msra.gmra.mxu1 %v2114_v9  ;;  %v2399_v9 = vld [vmem:[#allocation5 + $0x12] sm:$0x3] }
 0x679   :  { %2838 = vmatpush1.bf16.msra.mxu1 %v4065_v18  ;;  %v2404_v10 = vrot.slane %v2399_v9, %v4427_v14  ;;  %v2408_v13 = vrot.slane %v2399_v9, %v4429_v17 }
 0x67a   :  { %2839 = vmatprep.subr.bf16.mxu1 %v4070_v20 }
 0x67d   :  { %2840 = vmatpush1.bf16.msra.mxu1 %v4068_v29 }
 0x67e   :  { %2841 = vmatprep.subr.bf16.mxu1 %v4073_v21 }
 0x681   :  { %2842 = vmatpush1.bf16.msra.mxu1 %v4071_v30 }
 0x682   :  { %2843 = vmatprep.subr.bf16.mxu1 %v4076_v22 }
 0x685   :  { %2844 = vmatpush1.bf16.msra.mxu1 %v4074_v23 }
 0x686   :  { %2845 = vmatprep.subr.bf16.mxu1 %v4079_v24 }
 0x689   :  { %2846 = vmatpush1.bf16.msra.mxu1 %v4077_v25 }
 0x68a   :  { %2847 = vmatprep.subr.bf16.mxu1 %v4082_v26 }
 0x68d   :  { %2848 = vmatpush1.bf16.msra.mxu1 %v4080_v27 }
 0x68e   :  { %2849 = vmatprep.subr.bf16.mxu1 %v4085_v28 }
 0x691   :  { %2850 = vmatpush1.bf16.msra.mxu1 %v4083_v31 }
 0x692   :  { %2851 = vmatprep.subr.bf16.mxu1 %v4088_v45  ;;  %v4126_v45 = vld [vmem:[#allocation11 + $0x8] sm:$0xff]  }
 0x695   :  { %2852 = vmatpush1.bf16.msra.mxu1 %v4086_v46  ;;  %v4127_v46 = vld [vmem:[#allocation11 + $0x40] sm:$0xff]  }
 0x696   :  { %2853 = vmatprep.subr.bf16.mxu1 %v4091_v47  ;;  %v4128_v47 = vld [vmem:[#allocation11] sm:$0xff]  }
 0x699   :  { %2854 = vmatpush2.bf16.msra.mxu1 %v4089_v48  ;;  %v2665_v48 = vld [vmem:[#allocation5 + $0x14] sm:$0x3] }
 0x69a   :  { %2855 = vmatprep.subr.bf16.mxu1 %v4094_v49  ;;  %v2670_v49 = vrot.slane %v2665_v48, %v4427_v14  ;;  %v4130_v14 = vld [vmem:[#allocation13 + $0x30] sm:$0xff]  }
 0x69d   :  { %2856 = vmatpush2.bf16.msra.mxu1 %v4092_v50  ;;  %v2674_v50 = vrot.slane %v2665_v48, %v4429_v17  ;;  %v4131_v17 = vld [vmem:[#allocation13 + $0x28] sm:$0xff]  }
 0x738   :  { %v2355_v35 = vpop.f32.mrf.mxu1 }
 0x739   :  { %v2356_v36 = vadd.f32 %v2355_v35, %v2154_v33 }
 0x73a   :  { %v2357_v37 = vpop.f32.mrf.mxu1 }
 0x73b   :  { %v2358_v38 = vadd.f32 %v2357_v37, %v2158_v34  ;;  %v2362_v39 = vpack.c.bf16 %v2356_v36, %v2356_v36 }
 0x73c   :  { %v2359_v40 = vpop.f32.mrf.mxu1 }
 0x73d   :  { %v2363_v41 = vpack.c.bf16 %v2358_v38, %v2358_v38  ;;  %v4473_v44 = vadd.bf16 %v2362_v39, %v4461_v60  ;;  %v4098_v60 = vld [vmem:[#allocation10 + $0x7c0] ss:$8 sps:$4 sm:$0xff]  }
 0x73e   :  { %v2360_v42 = vpop.f32.mrf.mxu1 }
 0x73f   :  { %v4470_v43 = vadd.bf16 %v2363_v41, %v4458_v59  ;;  %v4097_v59 = vld [vmem:[#allocation10 + $0x7d4] ss:$8 sps:$4 sm:$0xff]   ;;  %v4125_v42 = vld [vmem:[#allocation11 + $0x48] sm:$0xff]  }
 0x740   :  { %2857 = vmatprep.subr.bf16.mxu1 %v4097_v59 }
 0x741   :  { %2603 = vmatprep.mubr.bf16.mxu0 %v4470_v43  ;;  %2858 = vmatpush2.bf16.msra.mxu1 %v4095_v51 }
 0x742   :  { %2604 = vmatmul.mubr.bf16.vlgmr.msra.gmra.mxu0 %v4473_v44  ;;  %2859 = vmatprep.subr.bf16.mxu1 %v4100_v52 }
 0x743   :  { %3554 = vmatpush3.bf16.msra.mxu0 %v4114_v0  ;;  %v4135_v0 = vld [vmem:[#allocation13 + $0x8] sm:$0xff]  }
 0x744   :  { %3555 = vmatprep.subr.bf16.mxu0 %v4115_v1  ;;  %v4136_v1 = vld [vmem:[#allocation13] sm:$0xff]  }
 0x745   :  { %2860 = vmatpush2.bf16.msra.mxu1 %v4098_v60 }
 0x746   :  { %2861 = vmatprep.subr.bf16.mxu1 %v4103_v53 }
 0x747   :  { %3556 = vmatpush3.bf16.msra.mxu0 %v4116_v2 }
 0x748   :  { %3557 = vmatprep.subr.bf16.mxu0 %v4117_v11  ;;  %v3527_v11 = vld [vmem:[#allocation5 + $0x16] ss:$0 sm:$0xff] }
 0x749   :  { %2862 = vmatpush2.bf16.msra.mxu1 %v4101_v54 }
 0x74a   :  { %2863 = vmatprep.subr.bf16.mxu1 %v4106_v55 }
 0x74b   :  { %3558 = vmatpush3.bf16.msra.mxu0 %v4118_v3 }
 0x74c   :  { %3559 = vmatprep.subr.bf16.mxu0 %v4119_v12 }
 0x74d   :  { %2864 = vmatpush2.bf16.msra.mxu1 %v4104_v56 }
 0x74e   :  { %2865 = vmatprep.subr.bf16.mxu1 %v4109_v57 }
 0x74f   :  { %3560 = vmatpush3.bf16.msra.mxu0 %v4120_v4 }
 0x750   :  { %3561 = vmatprep.subr.bf16.mxu0 %v4121_v5 }
 0x751   :  { %2866 = vmatpush2.bf16.msra.mxu1 %v4107_v58 }
 0x752   :  { %2867 = vmatprep.subr.bf16.mxu1 %v4112_v61  ;;  %v4129_v61 = vld [vmem:[#allocation13 + $0x38] sm:$0xff]  }
 0x753   :  { %3562 = vmatpush3.bf16.msra.mxu0 %v4122_v6 }
 0x754   :  { %3563 = vmatprep.subr.bf16.mxu0 %v4123_v7 }
 0x755   :  { %2868 = vmatpush2.bf16.msra.mxu1 %v4110_v62  ;;  %v4351_v62 = vmov 0.0  }
 0x756   :  { %3584 = vmatprep.subr.bf16.mxu1 %v4351_v62 }
 0x757   :  { %3564 = vmatpush3.bf16.msra.mxu0 %v4124_v8 }
 0x758   :  { %3565 = vmatprep.subr.bf16.mxu0 %v4125_v42 }
 0x75b   :  { %3566 = vmatpush3.bf16.msra.mxu0 %v4126_v45 }
 0x75c   :  { %3567 = vmatprep.subr.bf16.mxu0 %v4127_v46 }
 0x75f   :  { %3568 = vmatpush3.bf16.msra.mxu0 %v4128_v47 }
 0x802   :  { %v2605_v15 = vpop.f32.mrf.mxu0 }
 0x803   :  { %v2606_v16 = vadd.f32 %v2605_v15, %v2404_v10 }
 0x804   :  { %v2607_v18 = vpop.f32.mrf.mxu0 }
 0x805   :  { %v2612_v19 = vpack.c.bf16 %v2606_v16, %v2606_v16  ;;  %v2608_v20 = vadd.f32 %v2607_v18, %v2408_v13 }
 0x806   :  { %v2609_v29 = vpop.f32.mrf.mxu0 }
 0x807   :  { %v2614_v21 = vmul.bf16 %v2612_v19, %v2612_v19  ;;  %v2613_v30 = vpack.c.bf16 %v2608_v20, %v2608_v20  ;;  %v3544_v29 = vld [vmem:[#allocation5 + $0x17] ss:$0 sm:$0xff] }
 0x808   :  { %v2610_v22 = vpop.f32.mrf.mxu0 }
 0x809   :  { %v2616_v23 = vmul.bf16 %v2614_v21, %v2612_v19  ;;  %v2615_v24 = vmul.bf16 %v2613_v30, %v2613_v30 }
 0x80b   :  { %v2618_v25 = vmul.bf16 1027030327, %v2616_v23  ;;  %v2617_v26 = vmul.bf16 %v2615_v24, %v2613_v30 }
 0x80d   :  { %v2620_v27 = vadd.bf16 %v2618_v25, %v2612_v19  ;;  %v2619_v28 = vmul.bf16 1027030327, %v2617_v26 }
 0x80f   :  { %v2622_v31 = vmul.bf16 1061961548, %v2620_v27  ;;  %v2621_v32 = vadd.bf16 %v2619_v28, %v2613_v30 }
 0x811   :  { %4161 = vtanh.bf16 %v2622_v31  ;;  %v2623_v33 = vmul.bf16 1061961548, %v2621_v32 }
 0x813   :  { %4163 = vtanh.bf16 %v2623_v33 }
 0x81f   :  { %v4162_v34 = vpop.eup %4161 }
 0x820   :  { %v2626_v35 = vadd.bf16 1065369472, %v4162_v34 }
 0x821   :  { %v4164_v36 = vpop.eup %4163 }
 0x822   :  { %v2627_v37 = vadd.bf16 1065369472, %v4164_v36  ;;  %v2628_v38 = vmul.bf16 1056980736, %v2626_v35 }
 0x824   :  { %v2629_v39 = vmul.bf16 1056980736, %v2627_v37  ;;  %v2630_v41 = vmul.bf16 %v2628_v38, %v2612_v19 }
 0x826   :  { %v2631_v40 = vmul.bf16 %v2629_v39, %v2613_v30 }
 0x828   :  { %2869 = vmatprep.mubr.bf16.mxu1 %v2631_v40 }
 0x829   :  { %2870 = vmatmul.mubr.bf16.vlgmr.msra.gmra.mxu1 %v2630_v41 }
 0x82a   :  { %3585 = vmatpush3.bf16.msra.mxu1 %v4129_v61  ;;  %3600 = vmatprep.mubr.msk.bf16.mxu1 %vm4352_vm1, %v4351_v62 }
 0x82b   :  { %3586 = vmatprep.subr.bf16.mxu1 %v4351_v62 }
 0x82e   :  { %3587 = vmatpush3.bf16.msra.mxu1 %v4130_v14 }
 0x82f   :  { %3588 = vmatprep.subr.bf16.mxu1 %v4351_v62 }
 0x832   :  { %3589 = vmatpush3.bf16.msra.mxu1 %v4131_v17 }
 0x833   :  { %3590 = vmatprep.subr.bf16.mxu1 %v4351_v62 }
 0x836   :  { %3591 = vmatpush3.bf16.msra.mxu1 %v4132_v63 }
 0x837   :  { %3592 = vmatprep.subr.bf16.mxu1 %v4351_v62 }
 0x8e9   :  { %v2871_v59 = vpop.f32.mrf.mxu1 }
 0x8ea   :  { %v2872_v51 = vadd.f32 %v2871_v59, %v2670_v49 }
 0x8eb   :  { %v2873_v60 = vpop.f32.mrf.mxu1 }
 0x8ec   :  { %v2874_v52 = vadd.f32 %v2873_v60, %v2674_v50  ;;  %v2878_v53 = vpack.c.bf16 %v2872_v51, %v2872_v51 }
 0x8ed   :  { %v2875_v54 = vpop.f32.mrf.mxu1 }
 0x8ee   :  { %v2879_v55 = vpack.c.bf16 %v2874_v52, %v2874_v52  ;;  %v2880_v58 = vadd.bf16 %v2878_v53, %v4473_v44  ;;  %v4134_v44 = vld [vmem:[#allocation13 + $0x10] sm:$0xff]  }
 0x8ef   :  { %v2876_v56 = vpop.f32.mrf.mxu1 }
 0x8f0   :  { %v2881_v57 = vadd.bf16 %v2879_v55, %v4470_v43  ;;  %v4133_v43 = vld [vmem:[#allocation13 + $0x18] sm:$0xff]  }
 0x8f1   :  { %3593 = vmatpush3.bf16.msra.mxu1 %v4133_v43 }
 0x8f2   :  { %3049 = vmatprep.mubr.bf16.mxu0 %v2881_v57  ;;  %3594 = vmatprep.subr.bf16.mxu1 %v4351_v62 }
 0x8f3   :  { %3050 = vmatmul.mubr.bf16.vlgmr.msra.gmra.mxu0 %v2880_v58 }
 0x8f5   :  { %3595 = vmatpush3.bf16.msra.mxu1 %v4134_v44 }
 0x8f6   :  { %3596 = vmatprep.subr.bf16.mxu1 %v4351_v62 }
 0x8f9   :  { %3597 = vmatpush3.bf16.msra.mxu1 %v4135_v0 }
 0x8fa   :  { %3598 = vmatprep.subr.bf16.mxu1 %v4351_v62 }
 0x8fd   :  { %3599 = vmatpush3.bf16.msra.mxu1 %v4136_v1 }
 0x9b3   :  { %v3569_v2 = vpop.f32.mrf.mxu0 }
 0x9b5   :  { %v3570_v3 = vpop.f32.mrf.mxu0 }
 0x9b6   :  { %v3571_v12 = vadd.f32 %v3570_v3, %v3569_v2 }
 0x9b7   :  { %v3572_v4 = vpop.f32.mrf.mxu0 }
 0x9b8   :  { %v3052_v5 = vadd.f32 %v3571_v12, %v3527_v11 }
 0x9b9   :  { %v3573_v6 = vpop.f32.mrf.mxu0 }
 0x9ba   :  { %v3057_v7 = vpack.c.bf16 %v3052_v5, %v3052_v5 }
 0x9bc   :  { %v3058_v8 = vmul.bf16 %v3057_v7, %v3057_v7 }
 0x9be   :  { %v3059_v9 = vmul.bf16 %v3058_v8, %v3057_v7 }
 0x9c0   :  { %v3060_v10 = vmul.bf16 1027030327, %v3059_v9 }
 0x9c2   :  { %v3061_v13 = vadd.bf16 %v3060_v10, %v3057_v7 }
 0x9c4   :  { %v3062_v15 = vmul.bf16 1061961548, %v3061_v13 }
 0x9c6   :  { %4165 = vtanh.bf16 %v3062_v15 }
 0x9d4   :  { %v4166_v16 = vpop.eup %4165 }
 0x9d5   :  { %v3064_v18 = vadd.bf16 1065369472, %v4166_v16 }
 0x9d7   :  { %v3065_v19 = vmul.bf16 1056980736, %v3064_v18 }
 0x9d9   :  { %v3066_v20 = vmul.bf16 %v3065_v19, %v3057_v7 }
 0x9db   :  { %3601 = vmatmul.mubr.bf16.vlgmr.msra.gmra.mxu1 %v3066_v20 }
 0xa9b   :  { %v3172_v21 = vpop.f32.mrf.mxu1 }
 0xa9c   :  { %v3173_v30 = vadd.f32 %v3544_v29, %v3172_v21 }
 0xa9d   :  { %v3602_v22 = vpop.f32.mrf.mxu1 }
 0xa9e   :  { %3178 = vst [vmem:[#allocation14] sm:$0xff] %v3173_v30 }
 0xa9f   :  { %v3175_v23 = vpop.f32.mrf.mxu1 }
 0xaa0   :  { %4318 = shalt.err (!%p4315_p11)
}
 0xaa1   :  { %3188 = dma.vmem_to_hbm [thread:$0]  %s3186_s6, 128, %s4493_s7, [#allocation4]   ;;  %v3603_v24 = vpop.f32.mrf.mxu1 }
 0xaa2   :  { %4335 = dma.done.wait [#allocation4], 128  }
 0xaa3   :  { %4336 = vsyncadd [#allocation4], 4294967168 }
 0xaa4   :  { %3192 = vsyncpa [#allocation3], 1 }
 0xaa5   :  { %3193 = vsyncpa [#allocation6], 1 }
 0xaa6   :  { %3194 = vsyncpa [#allocation9], 1 }
 0xaa7   :  { %3195 = vsyncpa [#allocation12], 1 }
 0xaa8   :  { %3196 = vsyncpa [#allocation4], 1 }

</bundles_post_ra>
